<compile_context>
chip_gen: v7x
topology: tpu7x:2x2x1
jax: 0.10.0
libtpu: 0.0.40
codegen_flags: <defaults>
</compile_context>

<pallas_src>
import jax
import jax.numpy as jnp
from jax.experimental import pallas as pl
from jax.experimental.pallas import tpu as pltpu


def _padded_bytes(shape, dtype):
    """VMEM footprint of one buffer after (8, 128) layout padding."""
    dims = list(shape)
    if len(dims) >= 1:
        dims[-1] = -(-dims[-1] // 128) * 128
    if len(dims) >= 2:
        dims[-2] = -(-dims[-2] // 8) * 8
    size = 1
    for d in dims:
        size *= int(d)
    return size * jnp.dtype(dtype).itemsize


def _pick_h_tile(h_out, target=64):
    """Largest divisor of h_out that is <= target (whole image if small)."""
    if h_out <= target:
        return h_out
    for th in range(target, 0, -1):
        if h_out % th == 0:
            return th
    return h_out


def simconv_forward(x, weight, bn_gamma, bn_beta, bn_mean, bn_var,
                    *, stride=1, groups=1, eps=1e-5, conv_bias=None):
    """SimConv forward: ReLU(BN(Conv2d(x))).

    x:      (N, Cin, H, W)
    weight: (Cout, Cin, k, k)   (PyTorch OIHW)
    bn_*:   (Cout,)             BatchNorm2d inference parameters
    """
    if groups != 1:
        # TODO(synk): grouped conv (groups > 1) not implemented in-kernel.
        raise NotImplementedError("simconv_forward currently supports groups=1")

    N, Cin, H, W = x.shape
    Cout, Cin_w, k, k2 = weight.shape
    assert k == k2 and Cin_w == Cin
    p = k // 2
    H_out = (H + 2 * p - k) // stride + 1
    W_out = (W + 2 * p - k) // stride + 1
    Hp, Wp = H + 2 * p, W + 2 * p

    # ---- layout plumbing (wrapper-side, no conv compute here) -------------
    x_nhwc = jnp.transpose(x, (0, 2, 3, 1))                       # (N, H, W, Cin)
    x_pad = jnp.pad(x_nhwc, ((0, 0), (p, p), (p, p), (0, 0)))     # (N, Hp, Wp, Cin)
    w_hwio = jnp.transpose(weight, (2, 3, 1, 0)).astype(x.dtype)  # (k, k, Cin, Cout)

    # Fold BatchNorm (and optional conv bias) into per-channel scale/shift.
    scale_1d = (bn_gamma / jnp.sqrt(bn_var + eps)).astype(jnp.float32)
    shift_1d = (bn_beta - bn_mean * scale_1d).astype(jnp.float32)
    if conv_bias is not None:
        shift_1d = shift_1d + conv_bias.astype(jnp.float32) * scale_1d
    scale = scale_1d.reshape(1, Cout)
    shift = shift_1d.reshape(1, Cout)

    # ---- tiling ------------------------------------------------------------
    TH = _pick_h_tile(H_out)          # output rows per grid step (divides H_out)
    HT = H_out // TH

    # ---- kernel ------------------------------------------------------------
    def kernel(x_ref, w_ref, scale_ref, shift_ref, o_ref):
        # x_ref:     (1, Hp, Wp, Cin)   full padded image of this batch element
        # w_ref:     (k, k, Cin, Cout)
        # scale_ref: (1, Cout) f32
        # shift_ref: (1, Cout) f32
        # o_ref:     (1, TH, W_out, Cout)
        h = pl.program_id(1)
        row0 = h * (TH * stride)
        acc = jnp.zeros((TH * W_out, Cout), jnp.float32)
        for kh in range(k):
            for kw in range(k):
                if stride == 1:
                    xs = x_ref[0, pl.ds(row0 + kh, TH), pl.ds(kw, W_out), :]
                else:
                    xs = x_ref[0,
                               pl.ds(row0 + kh, TH, stride=stride),
                               pl.ds(kw, W_out, stride=stride), :]
                # (TH*W_out, Cin) @ (Cin, Cout) on the MXU, f32 accumulation.
                acc = acc + jnp.dot(xs.reshape(TH * W_out, Cin),
                                    w_ref[kh, kw],
                                    preferred_element_type=jnp.float32)
        y = jnp.maximum(acc * scale_ref[...] + shift_ref[...], 0.0)
        o_ref[...] = y.reshape(1, TH, W_out, Cout).astype(o_ref.dtype)

    # ---- explicit VMEM budget (layout-padded, double-buffered) -------------
    x_block_b = _padded_bytes((1, Hp, Wp, Cin), x.dtype)
    o_block_b = _padded_bytes((1, TH, W_out, Cout), x.dtype)
    w_block_b = _padded_bytes((k, k, Cin, Cout), x.dtype)
    s_block_b = _padded_bytes((1, Cout), jnp.float32)
    vmem_limit = 2 * (x_block_b + o_block_b) + 2 * (w_block_b + 2 * s_block_b)
    vmem_limit = int(min(vmem_limit + (16 << 20), 64 << 20))

    out_nhwc = pl.pallas_call(
        kernel,
        out_shape=jax.ShapeDtypeStruct((N, H_out, W_out, Cout), x.dtype),
        grid_spec=pltpu.PrefetchScalarGridSpec(
            num_scalar_prefetch=0,
            grid=(N, HT),
            in_specs=[
                pl.BlockSpec((1, Hp, Wp, Cin), lambda b, h: (b, 0, 0, 0)),
                pl.BlockSpec((k, k, Cin, Cout), lambda b, h: (0, 0, 0, 0)),
                pl.BlockSpec((1, Cout), lambda b, h: (0, 0)),
                pl.BlockSpec((1, Cout), lambda b, h: (0, 0)),
            ],
            out_specs=pl.BlockSpec((1, TH, W_out, Cout),
                                   lambda b, h: (b, h, 0, 0)),
        ),
        compiler_params=pltpu.CompilerParams(
            dimension_semantics=("parallel", "arbitrary"),
            vmem_limit_bytes=vmem_limit,
        ),
    )(x_pad, w_hwio, scale, shift)

    return jnp.transpose(out_nhwc, (0, 3, 1, 2))                  # NCHW


def _simconv_reference(x, weight, bn_gamma, bn_beta, bn_mean, bn_var,
                       *, stride=1, eps=1e-5, conv_bias=None):
    """Pure-JAX reference replicating the PyTorch forward (eval-mode BN)."""
    k = weight.shape[-1]
    p = k // 2
    y = jax.lax.conv_general_dilated(
        x.astype(jnp.float32), weight.astype(jnp.float32),
        window_strides=(stride, stride),
        padding=((p, p), (p, p)),
        dimension_numbers=("NCHW", "OIHW", "NCHW"),
        precision=jax.lax.Precision.HIGHEST)
    if conv_bias is not None:
        y = y + conv_bias.astype(jnp.float32)[None, :, None, None]
    scale = bn_gamma / jnp.sqrt(bn_var + eps)
    shift = bn_beta - bn_mean * scale
    y = y * scale[None, :, None, None] + shift[None, :, None, None]
    return jnp.maximum(y, 0.0).astype(x.dtype)


if __name__ == "__main__":
    key = jax.random.PRNGKey(0)
    kx, kw, kg, kb, km, kv = jax.random.split(key, 6)

    N, Cin, Cout, H, W = 2, 4, 8, 16, 16
    k_size, stride = 3, 1

    x = jax.random.normal(kx, (N, Cin, H, W), dtype=jnp.float32)

    # Conv2d weight (kaiming-ish scale), BN parameters.
    fan_in = Cin * k_size * k_size
    weight = jax.random.normal(kw, (Cout, Cin, k_size, k_size),
                               dtype=jnp.float32) * (2.0 / fan_in) ** 0.5
    bn_gamma = jax.random.uniform(kg, (Cout,), minval=0.5, maxval=1.5,
                                  dtype=jnp.float32)
    bn_beta = jax.random.normal(kb, (Cout,), dtype=jnp.float32) * 0.1
    bn_mean = jax.random.normal(km, (Cout,), dtype=jnp.float32) * 0.1
    bn_var = jax.random.uniform(kv, (Cout,), minval=0.5, maxval=1.5,
                                dtype=jnp.float32)

    out = simconv_forward(x, weight, bn_gamma, bn_beta, bn_mean, bn_var,
                          stride=stride)
    out = jax.block_until_ready(out)

    ref = _simconv_reference(x, weight, bn_gamma, bn_beta, bn_mean, bn_var,
                             stride=stride)
    assert out.shape == ref.shape
    assert jnp.allclose(out, ref, atol=1e-3, rtol=1e-3), "mismatch vs reference"

    print("KERNEL_OK")
</pallas_src>

<mosaic_0001>
module attributes {stable_mosaic.version = 11 : i64} {
  func.func @kernel(%arg0: i32, %arg1: i32, %arg2: memref<1x18x18x4xf32, #tpu.memory_space<vmem>>, %arg3: memref<3x3x4x8xf32, #tpu.memory_space<vmem>>, %arg4: memref<1x8xf32, #tpu.memory_space<vmem>>, %arg5: memref<1x8xf32, #tpu.memory_space<vmem>>, %arg6: memref<1x16x16x8xf32, #tpu.memory_space<vmem>>) attributes {dimension_semantics = [#tpu.dimension_semantics<parallel>, #tpu.dimension_semantics<arbitrary>], iteration_bounds = array<i64: 2, 1>, scalar_prefetch = 0 : i64, scratch_operands = 0 : i64, tpu.core_type = #tpu.core_type<tc>, window_params = [{transform_indices = @transform_0, window_bounds = array<i64: 1, 18, 18, 4>}, {pipeline_mode = #tpu.pipeline_mode<synchronous>, transform_indices = @transform_1, window_bounds = array<i64: 3, 3, 4, 8>}, {pipeline_mode = #tpu.pipeline_mode<synchronous>, transform_indices = @transform_2, window_bounds = array<i64: 1, 8>}, {pipeline_mode = #tpu.pipeline_mode<synchronous>, transform_indices = @transform_3, window_bounds = array<i64: 1, 8>}, {transform_indices = @transform_4, window_bounds = array<i64: 1, 16, 16, 8>}]} {
    %c16_i32 = arith.constant 16 : i32
    %0 = arith.muli %arg1, %c16_i32 : i32
    %cst = arith.constant 0.000000e+00 : f32
    %1 = vector.broadcast %cst : f32 to vector<256x8xf32>
    %c0_i32 = arith.constant 0 : i32
    %2 = arith.addi %0, %c0_i32 : i32
    %c0 = arith.constant 0 : index
    %3 = arith.index_cast %2 : i32 to index
    %c0_0 = arith.constant 0 : index
    %c0_1 = arith.constant 0 : index
    %4 = vector.load %arg2[%c0, %3, %c0_0, %c0_1] : memref<1x18x18x4xf32, #tpu.memory_space<vmem>>, vector<1x16x16x4xf32>
    %5 = vector.shape_cast %4 : vector<1x16x16x4xf32> to vector<16x16x4xf32>
    %6 = vector.shape_cast %5 : vector<16x16x4xf32> to vector<256x4xf32>
    %c0_2 = arith.constant 0 : index
    %c0_3 = arith.constant 0 : index
    %c0_4 = arith.constant 0 : index
    %c0_5 = arith.constant 0 : index
    %7 = vector.load %arg3[%c0_2, %c0_3, %c0_4, %c0_5] : memref<3x3x4x8xf32, #tpu.memory_space<vmem>>, vector<1x1x4x8xf32>
    %8 = vector.shape_cast %7 : vector<1x1x4x8xf32> to vector<4x8xf32>
    %cst_6 = arith.constant dense<0.000000e+00> : vector<256x8xf32>
    %9 = tpu.matmul %6, %8, %cst_6 {dimension_numbers = #tpu.dot_dimension_numbers<[1], [0], [0], [1], [0, 0, 1, 1], [], []>} : vector<256x4xf32>, vector<4x8xf32>, vector<256x8xf32> -> vector<256x8xf32>
    %10 = arith.addf %1, %9 : vector<256x8xf32>
    %c0_i32_7 = arith.constant 0 : i32
    %11 = arith.addi %0, %c0_i32_7 : i32
    %c0_8 = arith.constant 0 : index
    %12 = arith.index_cast %11 : i32 to index
    %c1 = arith.constant 1 : index
    %c0_9 = arith.constant 0 : index
    %13 = vector.load %arg2[%c0_8, %12, %c1, %c0_9] : memref<1x18x18x4xf32, #tpu.memory_space<vmem>>, vector<1x16x16x4xf32>
    %14 = vector.shape_cast %13 : vector<1x16x16x4xf32> to vector<16x16x4xf32>
    %15 = vector.shape_cast %14 : vector<16x16x4xf32> to vector<256x4xf32>
    %c0_10 = arith.constant 0 : index
    %c1_11 = arith.constant 1 : index
    %c0_12 = arith.constant 0 : index
    %c0_13 = arith.constant 0 : index
    %16 = vector.load %arg3[%c0_10, %c1_11, %c0_12, %c0_13] : memref<3x3x4x8xf32, #tpu.memory_space<vmem>>, vector<1x1x4x8xf32>
    %17 = vector.shape_cast %16 : vector<1x1x4x8xf32> to vector<4x8xf32>
    %cst_14 = arith.constant dense<0.000000e+00> : vector<256x8xf32>
    %18 = tpu.matmul %15, %17, %cst_14 {dimension_numbers = #tpu.dot_dimension_numbers<[1], [0], [0], [1], [0, 0, 1, 1], [], []>} : vector<256x4xf32>, vector<4x8xf32>, vector<256x8xf32> -> vector<256x8xf32>
    %19 = arith.addf %10, %18 : vector<256x8xf32>
    %c0_i32_15 = arith.constant 0 : i32
    %20 = arith.addi %0, %c0_i32_15 : i32
    %c0_16 = arith.constant 0 : index
    %21 = arith.index_cast %20 : i32 to index
    %c2 = arith.constant 2 : index
    %c0_17 = arith.constant 0 : index
    %22 = vector.load %arg2[%c0_16, %21, %c2, %c0_17] : memref<1x18x18x4xf32, #tpu.memory_space<vmem>>, vector<1x16x16x4xf32>
    %23 = vector.shape_cast %22 : vector<1x16x16x4xf32> to vector<16x16x4xf32>
    %24 = vector.shape_cast %23 : vector<16x16x4xf32> to vector<256x4xf32>
    %c0_18 = arith.constant 0 : index
    %c2_19 = arith.constant 2 : index
    %c0_20 = arith.constant 0 : index
    %c0_21 = arith.constant 0 : index
    %25 = vector.load %arg3[%c0_18, %c2_19, %c0_20, %c0_21] : memref<3x3x4x8xf32, #tpu.memory_space<vmem>>, vector<1x1x4x8xf32>
    %26 = vector.shape_cast %25 : vector<1x1x4x8xf32> to vector<4x8xf32>
    %cst_22 = arith.constant dense<0.000000e+00> : vector<256x8xf32>
    %27 = tpu.matmul %24, %26, %cst_22 {dimension_numbers = #tpu.dot_dimension_numbers<[1], [0], [0], [1], [0, 0, 1, 1], [], []>} : vector<256x4xf32>, vector<4x8xf32>, vector<256x8xf32> -> vector<256x8xf32>
    %28 = arith.addf %19, %27 : vector<256x8xf32>
    %c1_i32 = arith.constant 1 : i32
    %29 = arith.addi %0, %c1_i32 : i32
    %c0_23 = arith.constant 0 : index
    %30 = arith.index_cast %29 : i32 to index
    %c0_24 = arith.constant 0 : index
    %c0_25 = arith.constant 0 : index
    %31 = vector.load %arg2[%c0_23, %30, %c0_24, %c0_25] : memref<1x18x18x4xf32, #tpu.memory_space<vmem>>, vector<1x16x16x4xf32>
    %32 = vector.shape_cast %31 : vector<1x16x16x4xf32> to vector<16x16x4xf32>
    %33 = vector.shape_cast %32 : vector<16x16x4xf32> to vector<256x4xf32>
    %c1_26 = arith.constant 1 : index
    %c0_27 = arith.constant 0 : index
    %c0_28 = arith.constant 0 : index
    %c0_29 = arith.constant 0 : index
    %34 = vector.load %arg3[%c1_26, %c0_27, %c0_28, %c0_29] : memref<3x3x4x8xf32, #tpu.memory_space<vmem>>, vector<1x1x4x8xf32>
    %35 = vector.shape_cast %34 : vector<1x1x4x8xf32> to vector<4x8xf32>
    %cst_30 = arith.constant dense<0.000000e+00> : vector<256x8xf32>
    %36 = tpu.matmul %33, %35, %cst_30 {dimension_numbers = #tpu.dot_dimension_numbers<[1], [0], [0], [1], [0, 0, 1, 1], [], []>} : vector<256x4xf32>, vector<4x8xf32>, vector<256x8xf32> -> vector<256x8xf32>
    %37 = arith.addf %28, %36 : vector<256x8xf32>
    %c1_i32_31 = arith.constant 1 : i32
    %38 = arith.addi %0, %c1_i32_31 : i32
    %c0_32 = arith.constant 0 : index
    %39 = arith.index_cast %38 : i32 to index
    %c1_33 = arith.constant 1 : index
    %c0_34 = arith.constant 0 : index
    %40 = vector.load %arg2[%c0_32, %39, %c1_33, %c0_34] : memref<1x18x18x4xf32, #tpu.memory_space<vmem>>, vector<1x16x16x4xf32>
    %41 = vector.shape_cast %40 : vector<1x16x16x4xf32> to vector<16x16x4xf32>
    %42 = vector.shape_cast %41 : vector<16x16x4xf32> to vector<256x4xf32>
    %c1_35 = arith.constant 1 : index
    %c1_36 = arith.constant 1 : index
    %c0_37 = arith.constant 0 : index
    %c0_38 = arith.constant 0 : index
    %43 = vector.load %arg3[%c1_35, %c1_36, %c0_37, %c0_38] : memref<3x3x4x8xf32, #tpu.memory_space<vmem>>, vector<1x1x4x8xf32>
    %44 = vector.shape_cast %43 : vector<1x1x4x8xf32> to vector<4x8xf32>
    %cst_39 = arith.constant dense<0.000000e+00> : vector<256x8xf32>
    %45 = tpu.matmul %42, %44, %cst_39 {dimension_numbers = #tpu.dot_dimension_numbers<[1], [0], [0], [1], [0, 0, 1, 1], [], []>} : vector<256x4xf32>, vector<4x8xf32>, vector<256x8xf32> -> vector<256x8xf32>
    %46 = arith.addf %37, %45 : vector<256x8xf32>
    %c1_i32_40 = arith.constant 1 : i32
    %47 = arith.addi %0, %c1_i32_40 : i32
    %c0_41 = arith.constant 0 : index
    %48 = arith.index_cast %47 : i32 to index
    %c2_42 = arith.constant 2 : index
    %c0_43 = arith.constant 0 : index
    %49 = vector.load %arg2[%c0_41, %48, %c2_42, %c0_43] : memref<1x18x18x4xf32, #tpu.memory_space<vmem>>, vector<1x16x16x4xf32>
    %50 = vector.shape_cast %49 : vector<1x16x16x4xf32> to vector<16x16x4xf32>
    %51 = vector.shape_cast %50 : vector<16x16x4xf32> to vector<256x4xf32>
    %c1_44 = arith.constant 1 : index
    %c2_45 = arith.constant 2 : index
    %c0_46 = arith.constant 0 : index
    %c0_47 = arith.constant 0 : index
    %52 = vector.load %arg3[%c1_44, %c2_45, %c0_46, %c0_47] : memref<3x3x4x8xf32, #tpu.memory_space<vmem>>, vector<1x1x4x8xf32>
    %53 = vector.shape_cast %52 : vector<1x1x4x8xf32> to vector<4x8xf32>
    %cst_48 = arith.constant dense<0.000000e+00> : vector<256x8xf32>
    %54 = tpu.matmul %51, %53, %cst_48 {dimension_numbers = #tpu.dot_dimension_numbers<[1], [0], [0], [1], [0, 0, 1, 1], [], []>} : vector<256x4xf32>, vector<4x8xf32>, vector<256x8xf32> -> vector<256x8xf32>
    %55 = arith.addf %46, %54 : vector<256x8xf32>
    %c2_i32 = arith.constant 2 : i32
    %56 = arith.addi %0, %c2_i32 : i32
    %c0_49 = arith.constant 0 : index
    %57 = arith.index_cast %56 : i32 to index
    %c0_50 = arith.constant 0 : index
    %c0_51 = arith.constant 0 : index
    %58 = vector.load %arg2[%c0_49, %57, %c0_50, %c0_51] : memref<1x18x18x4xf32, #tpu.memory_space<vmem>>, vector<1x16x16x4xf32>
    %59 = vector.shape_cast %58 : vector<1x16x16x4xf32> to vector<16x16x4xf32>
    %60 = vector.shape_cast %59 : vector<16x16x4xf32> to vector<256x4xf32>
    %c2_52 = arith.constant 2 : index
    %c0_53 = arith.constant 0 : index
    %c0_54 = arith.constant 0 : index
    %c0_55 = arith.constant 0 : index
    %61 = vector.load %arg3[%c2_52, %c0_53, %c0_54, %c0_55] : memref<3x3x4x8xf32, #tpu.memory_space<vmem>>, vector<1x1x4x8xf32>
    %62 = vector.shape_cast %61 : vector<1x1x4x8xf32> to vector<4x8xf32>
    %cst_56 = arith.constant dense<0.000000e+00> : vector<256x8xf32>
    %63 = tpu.matmul %60, %62, %cst_56 {dimension_numbers = #tpu.dot_dimension_numbers<[1], [0], [0], [1], [0, 0, 1, 1], [], []>} : vector<256x4xf32>, vector<4x8xf32>, vector<256x8xf32> -> vector<256x8xf32>
    %64 = arith.addf %55, %63 : vector<256x8xf32>
    %c2_i32_57 = arith.constant 2 : i32
    %65 = arith.addi %0, %c2_i32_57 : i32
    %c0_58 = arith.constant 0 : index
    %66 = arith.index_cast %65 : i32 to index
    %c1_59 = arith.constant 1 : index
    %c0_60 = arith.constant 0 : index
    %67 = vector.load %arg2[%c0_58, %66, %c1_59, %c0_60] : memref<1x18x18x4xf32, #tpu.memory_space<vmem>>, vector<1x16x16x4xf32>
    %68 = vector.shape_cast %67 : vector<1x16x16x4xf32> to vector<16x16x4xf32>
    %69 = vector.shape_cast %68 : vector<16x16x4xf32> to vector<256x4xf32>
    %c2_61 = arith.constant 2 : index
    %c1_62 = arith.constant 1 : index
    %c0_63 = arith.constant 0 : index
    %c0_64 = arith.constant 0 : index
    %70 = vector.load %arg3[%c2_61, %c1_62, %c0_63, %c0_64] : memref<3x3x4x8xf32, #tpu.memory_space<vmem>>, vector<1x1x4x8xf32>
    %71 = vector.shape_cast %70 : vector<1x1x4x8xf32> to vector<4x8xf32>
    %cst_65 = arith.constant dense<0.000000e+00> : vector<256x8xf32>
    %72 = tpu.matmul %69, %71, %cst_65 {dimension_numbers = #tpu.dot_dimension_numbers<[1], [0], [0], [1], [0, 0, 1, 1], [], []>} : vector<256x4xf32>, vector<4x8xf32>, vector<256x8xf32> -> vector<256x8xf32>
    %73 = arith.addf %64, %72 : vector<256x8xf32>
    %c2_i32_66 = arith.constant 2 : i32
    %74 = arith.addi %0, %c2_i32_66 : i32
    %c0_67 = arith.constant 0 : index
    %75 = arith.index_cast %74 : i32 to index
    %c2_68 = arith.constant 2 : index
    %c0_69 = arith.constant 0 : index
    %76 = vector.load %arg2[%c0_67, %75, %c2_68, %c0_69] : memref<1x18x18x4xf32, #tpu.memory_space<vmem>>, vector<1x16x16x4xf32>
    %77 = vector.shape_cast %76 : vector<1x16x16x4xf32> to vector<16x16x4xf32>
    %78 = vector.shape_cast %77 : vector<16x16x4xf32> to vector<256x4xf32>
    %c2_70 = arith.constant 2 : index
    %c2_71 = arith.constant 2 : index
    %c0_72 = arith.constant 0 : index
    %c0_73 = arith.constant 0 : index
    %79 = vector.load %arg3[%c2_70, %c2_71, %c0_72, %c0_73] : memref<3x3x4x8xf32, #tpu.memory_space<vmem>>, vector<1x1x4x8xf32>
    %80 = vector.shape_cast %79 : vector<1x1x4x8xf32> to vector<4x8xf32>
    %cst_74 = arith.constant dense<0.000000e+00> : vector<256x8xf32>
    %81 = tpu.matmul %78, %80, %cst_74 {dimension_numbers = #tpu.dot_dimension_numbers<[1], [0], [0], [1], [0, 0, 1, 1], [], []>} : vector<256x4xf32>, vector<4x8xf32>, vector<256x8xf32> -> vector<256x8xf32>
    %82 = arith.addf %73, %81 : vector<256x8xf32>
    %c0_75 = arith.constant 0 : index
    %c0_76 = arith.constant 0 : index
    %83 = vector.load %arg4[%c0_75, %c0_76] : memref<1x8xf32, #tpu.memory_space<vmem>>, vector<1x8xf32>
    %84 = vector.broadcast %83 : vector<1x8xf32> to vector<256x8xf32>
    %85 = arith.mulf %82, %84 : vector<256x8xf32>
    %c0_77 = arith.constant 0 : index
    %c0_78 = arith.constant 0 : index
    %86 = vector.load %arg5[%c0_77, %c0_78] : memref<1x8xf32, #tpu.memory_space<vmem>>, vector<1x8xf32>
    %87 = vector.broadcast %86 : vector<1x8xf32> to vector<256x8xf32>
    %88 = arith.addf %85, %87 : vector<256x8xf32>
    %cst_79 = arith.constant 0.000000e+00 : f32
    %89 = vector.broadcast %cst_79 : f32 to vector<256x8xf32>
    %90 = arith.maximumf %88, %89 : vector<256x8xf32>
    %91 = vector.shape_cast %90 : vector<256x8xf32> to vector<1x16x16x8xf32>
    %c0_80 = arith.constant 0 : index
    %c0_81 = arith.constant 0 : index
    %c0_82 = arith.constant 0 : index
    %c0_83 = arith.constant 0 : index
    %92 = vector.load %arg6[%c0_80, %c0_81, %c0_82, %c0_83] : memref<1x16x16x8xf32, #tpu.memory_space<vmem>>, vector<1x16x16x8xf32>
    tpu.vector_store %arg6[%c0_80, %c0_81, %c0_82, %c0_83], %91 {strides = array<i32>} : memref<1x16x16x8xf32, #tpu.memory_space<vmem>>, vector<1x16x16x8xf32>,
    return
  }
  func.func @transform_0(%arg0: i32, %arg1: i32) -> (i32, i32, i32, i32) {
    %c0_i32 = arith.constant 0 : i32
    %c0_i32_0 = arith.constant 0 : i32
    %c0_i32_1 = arith.constant 0 : i32
    %c0_i32_2 = arith.constant 0 : i32
    return %arg0, %c0_i32, %c0_i32_0, %c0_i32_1 : i32, i32, i32, i32
  }
  func.func @transform_1(%arg0: i32, %arg1: i32) -> (i32, i32, i32, i32) {
    %c0_i32 = arith.constant 0 : i32
    %c0_i32_0 = arith.constant 0 : i32
    %c0_i32_1 = arith.constant 0 : i32
    %c0_i32_2 = arith.constant 0 : i32
    %c0_i32_3 = arith.constant 0 : i32
    return %c0_i32, %c0_i32_0, %c0_i32_1, %c0_i32_2 : i32, i32, i32, i32
  }
  func.func @transform_2(%arg0: i32, %arg1: i32) -> (i32, i32) {
    %c0_i32 = arith.constant 0 : i32
    %c0_i32_0 = arith.constant 0 : i32
    %c0_i32_1 = arith.constant 0 : i32
    return %c0_i32, %c0_i32_0 : i32, i32
  }
  func.func @transform_3(%arg0: i32, %arg1: i32) -> (i32, i32) {
    %c0_i32 = arith.constant 0 : i32
    %c0_i32_0 = arith.constant 0 : i32
    %c0_i32_1 = arith.constant 0 : i32
    return %c0_i32, %c0_i32_0 : i32, i32
  }
  func.func @transform_4(%arg0: i32, %arg1: i32) -> (i32, i32, i32, i32) {
    %c0_i32 = arith.constant 0 : i32
    %c0_i32_0 = arith.constant 0 : i32
    %c0_i32_1 = arith.constant 0 : i32
    return %arg0, %arg1, %c0_i32, %c0_i32_0 : i32, i32, i32, i32
  }
}

</mosaic_0001>

<bundles_post_ra>
// kernel: tpu_custom_call.1
= control target key start
LH: loop header
LB: loop body
LE: loop exit
PB: predicated region body
PF: predicated region fallthrough
CT: control target
= control target key end

     0   :  { %s5508_s15 = smov 0   ;;  %s5510_s16 = smov 0   ;;  %s6630_s0 = inlined_call_operand.vmem [shape: f32[2,18,18,4], index: 0, kind: input, shape index: {}]   ;;  %s6631_s1 = inlined_call_operand.vmem [shape: f32[3,3,4,8], index: 1, kind: input, shape index: {}]   ;;  %s6632_s2 = inlined_call_operand.vmem [shape: f32[1,8], index: 2, kind: input, shape index: {}]   ;;  %s6633_s3 = inlined_call_operand.vmem [shape: f32[1,8], index: 3, kind: input, shape index: {}]   ;;  %s6634_s4 = inlined_call_operand.vmem [shape: f32[2,16,16,8], index: 4, kind: output, shape index: {}]  }
   0x1   :  { %s5512_s17 = smov 0  }
   0x2 LB: > { %s26_s18 = sadd.s32 1, %s5477_s16  ;;  %p3923_p0 = scmp.ge.s32.totalorder %s5481_s17, 1  ;;  %s5481_s17 = sphi %s5512_s17, %s14_s17   ;;  %s5477_s16 = sphi %s5510_s16, %s6745_s16   ;;  %s5473_s15 = sphi %s5508_s15, %s6744_s15  }
   0x3   : > { %p28_p1 = scmp.ge.s32.totalorder %s26_s18, 2  ;;  %p176_p2 = scmp.lt.s32.totalorder %s5481_s17, 3 }
   0x5   : > { %s6747_s18 = smov (%p28_p1, %s26_s18), 0  ;;  %p177_p3 = pnand %p3923_p0, %p176_p2 }
   0x7   : > { %180 = sbr.rel (%p177_p3) target bundleno = 528 (0x210), region = 36 }
   0xe   : > { %v3927_v0 = vld [vmem:[%s6631_s1 + $0x4] sm:$0xf]  ;;  %vm390_vm0 = vcmask 1043456   ;;  %v5532_v1 = vld [vmem:[%s6631_s1 + $0x10] sm:$0xf]  ;;  %p207_p4 = scmp.lt.s32.totalorder %s5473_s15, 1 }
   0xf   : > { %4726 = vmatprep.subr.msk.mxu1 %vm390_vm0, %v3927_v0  ;;  %4926 = vmatprep.subr.msk.mxu0 %vm390_vm0, %v5532_v1  ;;  %v258_v2 = vld [vmem:[%s6631_s1] sm:$0xf]  ;;  %v4192_v3 = vld [vmem:[%s6631_s1 + $0x14] sm:$0xf]  ;;  %vm293_vm1 = vcmask 31744   ;;  %vm3789_vm2 = vcmask 64512  }
  0x10   : > { %4727 = vmatpush3.msk.msra.mxu1 %vm390_vm0, %v3927_v0  ;;  %4927 = vmatpush3.msk.msra.mxu0 %vm390_vm0, %v5532_v1  ;;  %s6749_s15 = smov (!%p207_p4, %s5473_s15), 1  ;;  %v4258_v9 = vld [vmem:[%s6631_s1 + $0x18] sm:$0xf]  ;;  %v5573_v10 = vld [vmem:[%s6631_s1 + $0x8] sm:$0xf] }
  0x11   : > { %4776 = vmatprep.subr.msk.mxu1 %vm390_vm0, %v258_v2  ;;  %4976 = vmatprep.subr.msk.mxu0 %vm390_vm0, %v4192_v3  ;;  %s5434_s27 = smul.u32 432, %s6749_s15  ;;  %v5692_v28 = vld [vmem:[%s6631_s1 + $0x1c] sm:$0xf]  ;;  %v5855_v61 = vld [vmem:[%s6631_s1 + $0xc] sm:$0xf]  ;;  %s4428_s23 = sshll.u32 %s6749_s15, 8 }
  0x12   : > { %s6488_s26 = scalar_lea.vmem %s6634_s4, %s4428_s23 }
  0x13   : > { %s5554_s30 = scalar_lea.vmem %s6630_s0, %s5434_s27 }
  0x14   : > { %v259_v4 = vld [vmem:[%s5554_s30 + $0x1] sm:$0xff]  ;;  %v4094_v5 = vld [vmem:[%s5554_s30 + $0x19] sm:$0xff]  ;;  %v260_v6 = vld [vmem:[%s5554_s30 + $0x9] sm:$0xff] }
  0x15   : > { %4728 = vmatprep.mubr.msk.f32.mxu1 %vm293_vm1, %v259_v4  ;;  %4928 = vmatprep.mubr.msk.f32.mxu0 %vm293_vm1, %v4094_v5  ;;  %v4095_v7 = vld [vmem:[%s5554_s30 + $0x21] sm:$0xff]  ;;  %v5563_v8 = vld [vmem:[%s5554_s30 + $0x31] sm:$0xff]  ;;  %v5578_v11 = vld [vmem:[%s5554_s30 + $0x39] sm:$0xff] }
  0x16   : > { %4729 = vmatmul.mubr.msk.f32.vlgmr.msra.gmra.mrb[0].mxu1 %vm293_vm1, %v260_v6  ;;  %4929 = vmatmul.mubr.msk.f32.vlgmr.msra.gmra.mrb[0].mxu0 %vm293_vm1, %v4095_v7  ;;  %v5584_v12 = vld [vmem:[%s5554_s30 + $0x49] sm:$0xff]  ;;  %v5597_v13 = vld [vmem:[%s5554_s30 + $0x51] sm:$0xff]  ;;  %v5600_v14 = vld [vmem:[%s5554_s30 + $0x61] sm:$0xff] }
  0x17   : > { %4777 = vmatpush3.msk.msra.mxu1 %vm390_vm0, %v258_v2  ;;  %4977 = vmatpush3.msk.msra.mxu0 %vm390_vm0, %v4192_v3  ;;  %v5611_v15 = vld [vmem:[%s5554_s30 + $0x69] sm:$0xff]  ;;  %v5614_v16 = vld [vmem:[%s5554_s30 + $0x79] sm:$0xff]  ;;  %v5625_v17 = vld [vmem:[%s5554_s30 + $0x81] sm:$0xff] }
  0x18   : > { %4731 = vmatprep.mubr.msk.f32.mxu1 %vm293_vm1, %v4094_v5  ;;  %4931 = vmatprep.mubr.msk.f32.mxu0 %vm293_vm1, %v5563_v8  ;;  %v5628_v18 = vld [vmem:[%s5554_s30 + $0x91] sm:$0xff]  ;;  %v5639_v19 = vld [vmem:[%s5554_s30 + $0x99] sm:$0xff]  ;;  %v5642_v20 = vld [vmem:[%s5554_s30 + $0xa9] sm:$0xff] }
  0x19   : > { %5026 = vmatprep.subr.msk.mxu0 %vm390_vm0, %v4258_v9  ;;  %4826 = vmatprep.subr.msk.mxu1 %vm390_vm0, %v5573_v10  ;;  %v5653_v21 = vld [vmem:[%s5554_s30 + $0xb1] sm:$0xff]  ;;  %v5656_v22 = vld [vmem:[%s5554_s30 + $0xc1] sm:$0xff]  ;;  %v5667_v23 = vld [vmem:[%s5554_s30 + $0xc9] sm:$0xff] }
  0x1a   : > { %4732 = vmatmul.mubr.msk.f32.gmra.mrb[2].mxu1 %vm293_vm1, %v4095_v7  ;;  %4932 = vmatmul.mubr.msk.f32.gmra.mrb[2].mxu0 %vm293_vm1, %v5578_v11  ;;  %v5670_v24 = vld [vmem:[%s5554_s30 + $0x1a] sm:$0xff]  ;;  %v5681_v25 = vld [vmem:[%s5554_s30 + $0x22] sm:$0xff]  ;;  %v5687_v27 = vld [vmem:[%s5554_s30 + $0x32] sm:$0xff] }
  0x1b   : > { %4734 = vmatprep.mubr.msk.f32.mxu1 %vm293_vm1, %v5563_v8  ;;  %4934 = vmatprep.mubr.msk.f32.mxu0 %vm293_vm1, %v5584_v12  ;;  %v5684_v26 = vld [vmem:[%s5554_s30 + $0xd9] sm:$0xff]  ;;  %v5702_v29 = vld [vmem:[%s5554_s30 + $0xe1] sm:$0xff]  ;;  %v5710_v31 = vld [vmem:[%s5554_s30 + $0xf1] sm:$0xff] }
  0x1c   : > { %6680 = vst [vmem:[#allocation2_spill] sm:$0xff] %v5702_v29  ;;  %v5705_v30 = vld [vmem:[%s5554_s30 + $0x3a] sm:$0xff]  ;;  %6681 = vst [vmem:[#allocation3_spill] sm:$0xff] %v5710_v31  ;;  %v5713_v32 = vld [vmem:[%s5554_s30 + $0x4a] sm:$0xff] }
  0x1d   : > { %v5726_v33 = vld [vmem:[%s5554_s30 + $0xf9] sm:$0xff]  ;;  %v5732_v35 = vld [vmem:[%s5554_s30 + $0x109] sm:$0xff]  ;;  %v5746_v37 = vld [vmem:[%s5554_s30 + $0x111] sm:$0xff] }
  0x1e   : > { %4735 = vmatmul.mubr.msk.f32.gmra.mrb[4].mxu1 %vm293_vm1, %v5578_v11  ;;  %4935 = vmatmul.mubr.msk.f32.gmra.mrb[4].mxu0 %vm293_vm1, %v5597_v13  ;;  %6682 = vst [vmem:[#allocation4_spill] sm:$0xff] %v5726_v33  ;;  %v5729_v34 = vld [vmem:[%s5554_s30 + $0x52] sm:$0xff]  ;;  %6683 = vst [vmem:[#allocation5_spill] sm:$0xff] %v5732_v35  ;;  %v5735_v36 = vld [vmem:[%s5554_s30 + $0x62] sm:$0xff] }
  0x1f   : > { %4737 = vmatprep.mubr.msk.f32.mxu1 %vm293_vm1, %v5584_v12  ;;  %4937 = vmatprep.mubr.msk.f32.mxu0 %vm293_vm1, %v5600_v14  ;;  %6684 = vst [vmem:[#allocation6_spill] sm:$0xff] %v5746_v37  ;;  %v5749_v38 = vld [vmem:[%s5554_s30 + $0x6a] sm:$0xff]  ;;  %v5752_v39 = vld [vmem:[%s5554_s30 + $0x121] sm:$0xff]  ;;  %v5772_v43 = vld [vmem:[%s5554_s30 + $0x139] sm:$0xff] }
  0x20   : > { %6685 = vst [vmem:[#allocation7_spill] sm:$0xff] %v5752_v39  ;;  %v5755_v40 = vld [vmem:[%s5554_s30 + $0x7a] sm:$0xff]  ;;  %v5766_v41 = vld [vmem:[%s5554_s30 + $0x129] sm:$0xff]  ;;  %6687 = vst [vmem:[#allocation9_spill] sm:$0xff] %v5772_v43 }
  0x21   : > { %6686 = vst [vmem:[#allocation8_spill] sm:$0xff] %v5766_v41  ;;  %v5769_v42 = vld [vmem:[%s5554_s30 + $0x82] sm:$0xff]  ;;  %v5775_v44 = vld [vmem:[%s5554_s30 + $0x92] sm:$0xff]  ;;  %v5789_v46 = vld [vmem:[%s5554_s30 + $0x9a] sm:$0xff] }
  0x22   : > { %4738 = vmatmul.mubr.msk.f32.gmra.mrb[6].mxu1 %vm293_vm1, %v5597_v13  ;;  %4938 = vmatmul.mubr.msk.f32.gmra.mrb[6].mxu0 %vm293_vm1, %v5611_v15  ;;  %v5786_v45 = vld [vmem:[%s5554_s30 + $0x141] sm:$0xff]  ;;  %v5792_v47 = vld [vmem:[%s5554_s30 + $0x151] sm:$0xff]  ;;  %v5806_v49 = vld [vmem:[%s5554_s30 + $0x159] sm:$0xff] }
  0x23   : > { %4740 = vmatprep.mubr.msk.f32.mxu1 %vm293_vm1, %v5600_v14  ;;  %4940 = vmatprep.mubr.msk.f32.mxu0 %vm293_vm1, %v5614_v16  ;;  %6688 = vst [vmem:[#allocation10_spill] sm:$0xff] %v5786_v45  ;;  %6689 = vst [vmem:[#allocation11_spill] sm:$0xff] %v5792_v47  ;;  %v5795_v48 = vld [vmem:[%s5554_s30 + $0xaa] sm:$0xff]  ;;  %v5809_v50 = vld [vmem:[%s5554_s30 + $0xb2] sm:$0xff] }
  0x24   : > { %6690 = vst [vmem:[#allocation12_spill] sm:$0xff] %v5806_v49  ;;  %v5812_v51 = vld [vmem:[%s5554_s30 + $0x169] sm:$0xff]  ;;  %v5826_v53 = vld [vmem:[%s5554_s30 + $0x171] sm:$0xff]  ;;  %v226_v55 = vld [vmem:[%s5554_s30] sm:$0xff] }
  0x25   : > { %6691 = vst [vmem:[#allocation13_spill] sm:$0xff] %v5812_v51  ;;  %v5815_v52 = vld [vmem:[%s5554_s30 + $0xc2] sm:$0xff]  ;;  %6692 = vst [vmem:[#allocation14_spill] sm:$0xff] %v5826_v53  ;;  %v5829_v54 = vld [vmem:[%s5554_s30 + $0xca] sm:$0xff] }
  0x26   : > { %4741 = vmatmul.mubr.msk.f32.gmra.mrb[8].mxu1 %vm293_vm1, %v5611_v15  ;;  %4941 = vmatmul.mubr.msk.f32.gmra.mrb[8].mxu0 %vm293_vm1, %v5625_v17  ;;  %v5833_v56 = vld [vmem:[%s5554_s30 + $0xda] sm:$0xff]  ;;  %v227_v57 = vld [vmem:[%s5554_s30 + $0x8] sm:$0xff]  ;;  %v5850_v60 = vld [vmem:[%s5554_s30 + $0xf2] sm:$0xff] }
  0x27   : > { %4743 = vmatprep.mubr.msk.f32.mxu1 %vm293_vm1, %v5614_v16  ;;  %4943 = vmatprep.mubr.msk.f32.mxu0 %vm293_vm1, %v5628_v18  ;;  %v5844_v58 = vld [vmem:[%s5554_s30 + $0xe2] sm:$0xff]  ;;  %v5847_v59 = vld [vmem:[%s5554_s30 + $0x18] sm:$0xff]  ;;  %v5873_v0 = vld [vmem:[%s5554_s30 + $0x30] sm:$0xff] }
  0x28   : > { %6693 = vst [vmem:[#allocation15_spill] sm:$0xff] %v5847_v59  ;;  %v5865_v62 = vld [vmem:[%s5554_s30 + $0x20] sm:$0xff]  ;;  %6695 = vst [vmem:[#allocation17_spill] sm:$0xff] %v5873_v0  ;;  %v5876_v2 = vld [vmem:[%s5554_s30 + $0x10a] sm:$0xff] }
  0x29   : > { %6694 = vst [vmem:[#allocation16_spill] sm:$0xff] %v5865_v62  ;;  %v5868_v63 = vld [vmem:[%s5554_s30 + $0xfa] sm:$0xff]  ;;  %v5892_v4 = vld [vmem:[%s5554_s30 + $0x112] sm:$0xff]  ;;  %v5895_v5 = vld [vmem:[%s5554_s30 + $0x48] sm:$0xff] }
  0x2a   : > { %4744 = vmatmul.mubr.msk.f32.gmra.mrb[10].mxu1 %vm293_vm1, %v5625_v17  ;;  %4944 = vmatmul.mubr.msk.f32.gmra.mrb[10].mxu0 %vm293_vm1, %v5639_v19  ;;  %v5889_v3 = vld [vmem:[%s5554_s30 + $0x38] sm:$0xff]  ;;  %6697 = vst [vmem:[#allocation19_spill] sm:$0xff] %v5895_v5  ;;  %v5898_v6 = vld [vmem:[%s5554_s30 + $0x122] sm:$0xff]  ;;  %v5909_v7 = vld [vmem:[%s5554_s30 + $0x50] sm:$0xff] }
  0x2b   : > { %4746 = vmatprep.mubr.msk.f32.mxu1 %vm293_vm1, %v5628_v18  ;;  %4946 = vmatprep.mubr.msk.f32.mxu0 %vm293_vm1, %v5642_v20  ;;  %6696 = vst [vmem:[#allocation18_spill] sm:$0xff] %v5889_v3  ;;  %6698 = vst [vmem:[#allocation20_spill] sm:$0xff] %v5909_v7 }
  0x2e   : > { %4747 = vmatmul.mubr.msk.f32.gmra.mrb[12].mxu1 %vm293_vm1, %v5639_v19  ;;  %4947 = vmatmul.mubr.msk.f32.gmra.mrb[12].mxu0 %vm293_vm1, %v5653_v21 }
  0x2f   : > { %4749 = vmatprep.mubr.msk.f32.mxu1 %vm293_vm1, %v5642_v20  ;;  %4949 = vmatprep.mubr.msk.f32.mxu0 %vm293_vm1, %v5656_v22 }
  0x32   : > { %4750 = vmatmul.mubr.msk.f32.gmra.mrb[14].mxu1 %vm293_vm1, %v5653_v21  ;;  %4950 = vmatmul.mubr.msk.f32.gmra.mrb[14].mxu0 %vm293_vm1, %v5667_v23 }
  0x33   : > { %4752 = vmatprep.mubr.msk.f32.mxu1 %vm293_vm1, %v5656_v22  ;;  %4978 = vmatprep.mubr.msk.f32.mxu0 %vm293_vm1, %v5670_v24 }
  0x36   : > { %4753 = vmatmul.mubr.msk.f32.gmra.mrb[16].mxu1 %vm293_vm1, %v5667_v23  ;;  %4979 = vmatmul.mubr.msk.f32.vlgmr.msra.gmra.mrb[0].mxu0 %vm293_vm1, %v5681_v25 }
  0x37   : > { %5027 = vmatpush3.msk.msra.mxu0 %vm390_vm0, %v4258_v9  ;;  %4755 = vmatprep.mubr.msk.f32.mxu1 %vm293_vm1, %v5684_v26  ;;  %v5912_v9 = vld [vmem:[%s5554_s30 + $0x12a] sm:$0xff] }
  0x38   : > { %4981 = vmatprep.mubr.msk.f32.mxu0 %vm293_vm1, %v5687_v27  ;;  %5076 = vmatprep.subr.msk.mxu0 %vm390_vm0, %v5692_v28 }
  0x3a   : > { %4756 = vmatmul.mubr.msk.f32.gmra.mrb[18].mxu1 %vm293_vm1, %v5702_v29  ;;  %4982 = vmatmul.mubr.msk.f32.gmra.mrb[2].mxu0 %vm293_vm1, %v5705_v30  ;;  %v6009_v29 = vld [vmem:[%s5554_s30 + $0xd8] sm:$0xff] }
  0x3b   : > { %4758 = vmatprep.mubr.msk.f32.mxu1 %vm293_vm1, %v5710_v31  ;;  %4984 = vmatprep.mubr.msk.f32.mxu0 %vm293_vm1, %v5713_v32  ;;  %v5992_v31 = vld [vmem:[%s5554_s30 + $0x18a] sm:$0xff] }
  0x3c   : > { %6709 = vst [vmem:[#allocation31_spill] sm:$0xff] %v5992_v31 }
  0x3e   : > { %4759 = vmatmul.mubr.msk.f32.gmra.mrb[20].mxu1 %vm293_vm1, %v5726_v33  ;;  %4985 = vmatmul.mubr.msk.f32.gmra.mrb[4].mxu0 %vm293_vm1, %v5729_v34  ;;  %v5978_v33 = vld [vmem:[%s5554_s30 + $0x182] sm:$0xff] }
  0x3f   : > { %4761 = vmatprep.mubr.msk.f32.mxu1 %vm293_vm1, %v5732_v35  ;;  %4987 = vmatprep.mubr.msk.f32.mxu0 %vm293_vm1, %v5735_v36  ;;  %v5975_v35 = vld [vmem:[%s5554_s30 + $0xa8] sm:$0xff]  ;;  %6707 = vst [vmem:[#allocation29_spill] sm:$0xff] %v5978_v33 }
  0x40   : > { %6706 = vst [vmem:[#allocation28_spill] sm:$0xff] %v5975_v35 }
  0x42   : > { %4762 = vmatmul.mubr.msk.f32.gmra.mrb[22].mxu1 %vm293_vm1, %v5746_v37  ;;  %4988 = vmatmul.mubr.msk.f32.gmra.mrb[6].mxu0 %vm293_vm1, %v5749_v38  ;;  %v5972_v37 = vld [vmem:[%s5554_s30 + $0x172] sm:$0xff] }
  0x43   : > { %4764 = vmatprep.mubr.msk.f32.mxu1 %vm293_vm1, %v5752_v39  ;;  %4990 = vmatprep.mubr.msk.f32.mxu0 %vm293_vm1, %v5755_v40  ;;  %v5969_v39 = vld [vmem:[%s5554_s30 + $0x98] sm:$0xff]  ;;  %6705 = vst [vmem:[#allocation27_spill] sm:$0xff] %v5972_v37 }
  0x44   : > { %6704 = vst [vmem:[#allocation26_spill] sm:$0xff] %v5969_v39 }
  0x46   : > { %4765 = vmatmul.mubr.msk.f32.gmra.mrb[24].mxu1 %vm293_vm1, %v5766_v41  ;;  %4991 = vmatmul.mubr.msk.f32.gmra.mrb[8].mxu0 %vm293_vm1, %v5769_v42  ;;  %v5958_v41 = vld [vmem:[%s5554_s30 + $0x16a] sm:$0xff] }
  0x47   : > { %4767 = vmatprep.mubr.msk.f32.mxu1 %vm293_vm1, %v5772_v43  ;;  %4993 = vmatprep.mubr.msk.f32.mxu0 %vm293_vm1, %v5775_v44  ;;  %v5955_v43 = vld [vmem:[%s5554_s30 + $0x90] sm:$0xff] }
  0x48   : > { %6703 = vst [vmem:[#allocation25_spill] sm:$0xff] %v5955_v43 }
  0x4a   : > { %4768 = vmatmul.mubr.msk.f32.gmra.mrb[26].mxu1 %vm293_vm1, %v5786_v45  ;;  %4994 = vmatmul.mubr.msk.f32.gmra.mrb[10].mxu0 %vm293_vm1, %v5789_v46  ;;  %v5952_v45 = vld [vmem:[%s5554_s30 + $0x15a] sm:$0xff] }
  0x4b   : > { %4770 = vmatprep.mubr.msk.f32.mxu1 %vm293_vm1, %v5792_v47  ;;  %4996 = vmatprep.mubr.msk.f32.mxu0 %vm293_vm1, %v5795_v48  ;;  %v5949_v47 = vld [vmem:[%s5554_s30 + $0x80] sm:$0xff] }
  0x4c   : > { %6702 = vst [vmem:[#allocation24_spill] sm:$0xff] %v5949_v47 }
  0x4e   : > { %4771 = vmatmul.mubr.msk.f32.gmra.mrb[28].mxu1 %vm293_vm1, %v5806_v49  ;;  %4997 = vmatmul.mubr.msk.f32.gmra.mrb[12].mxu0 %vm293_vm1, %v5809_v50  ;;  %v5938_v49 = vld [vmem:[%s5554_s30 + $0x152] sm:$0xff] }
  0x4f   : > { %4773 = vmatprep.mubr.msk.f32.mxu1 %vm293_vm1, %v5812_v51  ;;  %4999 = vmatprep.mubr.msk.f32.mxu0 %vm293_vm1, %v5815_v52  ;;  %v5935_v51 = vld [vmem:[%s5554_s30 + $0x78] sm:$0xff] }
  0x50   : > { %6701 = vst [vmem:[#allocation23_spill] sm:$0xff] %v5935_v51 }
  0x52   : > { %4774 = vmatmul.mubr.msk.f32.gmra.mrb[30].mxu1 %vm293_vm1, %v5826_v53  ;;  %5000 = vmatmul.mubr.msk.f32.gmra.mrb[14].mxu0 %vm293_vm1, %v5829_v54  ;;  %v5932_v53 = vld [vmem:[%s5554_s30 + $0x142] sm:$0xff] }
  0x53   : > { %4778 = vmatprep.mubr.msk.f32.mxu1 %vm293_vm1, %v226_v55  ;;  %5002 = vmatprep.mubr.msk.f32.mxu0 %vm293_vm1, %v5833_v56  ;;  %v5918_v55 = vld [vmem:[%s5554_s30 + $0x13a] sm:$0xff] }
  0x56   : > { %4779 = vmatmul.mubr.msk.f32.vlgmr.msra.gmra.mrb[0].mxu1 %vm293_vm1, %v227_v57  ;;  %5003 = vmatmul.mubr.msk.f32.gmra.mrb[16].mxu0 %vm293_vm1, %v5844_v58  ;;  %v5929_v57 = vld [vmem:[%s5554_s30 + $0x68] sm:$0xff] }
  0x57   : > { %4827 = vmatpush3.msk.msra.mxu1 %vm390_vm0, %v5573_v10  ;;  %4781 = vmatprep.mubr.msk.f32.mxu1 %vm293_vm1, %v5847_v59  ;;  %v5915_v10 = vld [vmem:[%s5554_s30 + $0x60] sm:$0xff]  ;;  %6700 = vst [vmem:[#allocation22_spill] sm:$0xff] %v5929_v57 }
  0x58   : > { %5005 = vmatprep.mubr.msk.f32.mxu0 %vm293_vm1, %v5850_v60  ;;  %4876 = vmatprep.subr.msk.mxu1 %vm390_vm0, %v5855_v61  ;;  %6699 = vst [vmem:[#allocation21_spill] sm:$0xff] %v5915_v10  ;;  %v5995_v59 = vld [vmem:[%s5554_s30 + $0xc0] sm:$0xff] }
  0x5a   : > { %4782 = vmatmul.mubr.msk.f32.gmra.mrb[2].mxu1 %vm293_vm1, %v5865_v62  ;;  %5006 = vmatmul.mubr.msk.f32.gmra.mrb[18].mxu0 %vm293_vm1, %v5868_v63  ;;  %v5989_v62 = vld [vmem:[%s5554_s30 + $0xb0] sm:$0xff] }
  0x5b   : > { %4784 = vmatprep.mubr.msk.f32.mxu1 %vm293_vm1, %v5873_v0  ;;  %5008 = vmatprep.mubr.msk.f32.mxu0 %vm293_vm1, %v5876_v2  ;;  %6708 = vst [vmem:[#allocation30_spill] sm:$0xff] %v5989_v62 }
  0x5e   : > { %4785 = vmatmul.mubr.msk.f32.gmra.mrb[4].mxu1 %vm293_vm1, %v5889_v3  ;;  %5009 = vmatmul.mubr.msk.f32.gmra.mrb[20].mxu0 %vm293_vm1, %v5892_v4 }
  0x5f   : > { %4787 = vmatprep.mubr.msk.f32.mxu1 %vm293_vm1, %v5895_v5  ;;  %5011 = vmatprep.mubr.msk.f32.mxu0 %vm293_vm1, %v5898_v6 }
  0x62   : > { %4788 = vmatmul.mubr.msk.f32.gmra.mrb[6].mxu1 %vm293_vm1, %v5909_v7  ;;  %5012 = vmatmul.mubr.msk.f32.gmra.mrb[22].mxu0 %vm293_vm1, %v5912_v9 }
  0x63   : > { %4790 = vmatprep.mubr.msk.f32.mxu1 %vm293_vm1, %v5915_v10  ;;  %5014 = vmatprep.mubr.msk.f32.mxu0 %vm293_vm1, %v5918_v55 }
  0x66   : > { %4791 = vmatmul.mubr.msk.f32.gmra.mrb[8].mxu1 %vm293_vm1, %v5929_v57  ;;  %5015 = vmatmul.mubr.msk.f32.gmra.mrb[24].mxu0 %vm293_vm1, %v5932_v53 }
  0x67   : > { %4793 = vmatprep.mubr.msk.f32.mxu1 %vm293_vm1, %v5935_v51  ;;  %5017 = vmatprep.mubr.msk.f32.mxu0 %vm293_vm1, %v5938_v49 }
  0x6a   : > { %4794 = vmatmul.mubr.msk.f32.gmra.mrb[10].mxu1 %vm293_vm1, %v5949_v47  ;;  %5018 = vmatmul.mubr.msk.f32.gmra.mrb[26].mxu0 %vm293_vm1, %v5952_v45 }
  0x6b   : > { %4796 = vmatprep.mubr.msk.f32.mxu1 %vm293_vm1, %v5955_v43  ;;  %5020 = vmatprep.mubr.msk.f32.mxu0 %vm293_vm1, %v5958_v41 }
  0x6e   : > { %4797 = vmatmul.mubr.msk.f32.gmra.mrb[12].mxu1 %vm293_vm1, %v5969_v39  ;;  %5021 = vmatmul.mubr.msk.f32.gmra.mrb[28].mxu0 %vm293_vm1, %v5972_v37  ;;  %v6014_v37 = vld [vmem:[%s6631_s1 + $0x20] sm:$0xf] }
  0x6f   : > { %4799 = vmatprep.mubr.msk.f32.mxu1 %vm293_vm1, %v5975_v35  ;;  %5023 = vmatprep.mubr.msk.f32.mxu0 %vm293_vm1, %v5978_v33  ;;  %v6006_v33 = vld [vmem:[%s5554_s30 + $0xc8] sm:$0xff] }
  0x70   : > { %6710 = vst [vmem:[#allocation32_spill] sm:$0xff] %v6006_v33 }
  0x72   : > { %4800 = vmatmul.mubr.msk.f32.gmra.mrb[14].mxu1 %vm293_vm1, %v5989_v62  ;;  %5024 = vmatmul.mubr.msk.f32.gmra.mrb[30].mxu0 %vm293_vm1, %v5992_v31  ;;  %v6025_v31 = vld [vmem:[%s5554_s30 + $0xe0] sm:$0xff] }
  0x73   : > { %4802 = vmatprep.mubr.msk.f32.mxu1 %vm293_vm1, %v5995_v59  ;;  %5028 = vmatprep.mubr.msk.f32.mxu0 %vm293_vm1, %v5873_v0  ;;  %v6030_v0 = vld [vmem:[%s5554_s30 + $0xf0] sm:$0xff] }
  0x76   : > { %4803 = vmatmul.mubr.msk.f32.gmra.mrb[16].mxu1 %vm293_vm1, %v6006_v33  ;;  %5029 = vmatmul.mubr.msk.f32.vlgmr.msra.gmra.mrb[0].mxu0 %vm293_vm1, %v5889_v3  ;;  %v943_v3 = vld [vmem:[%s5554_s30 + $0x2] sm:$0xff] }
  0x77   : > { %5077 = vmatpush3.msk.msra.mxu0 %vm390_vm0, %v5692_v28  ;;  %4805 = vmatprep.mubr.msk.f32.mxu1 %vm293_vm1, %v6009_v29  ;;  %v6043_v28 = vld [vmem:[%s5554_s30 + $0xf8] sm:$0xff] }
  0x78   : > { %5031 = vmatprep.mubr.msk.f32.mxu0 %vm293_vm1, %v5895_v5  ;;  %5126 = vmatprep.subr.msk.mxu0 %vm390_vm0, %v6014_v37  ;;  %v6046_v5 = vld [vmem:[%s5554_s30 + $0x108] sm:$0xff] }
  0x7a   : > { %4806 = vmatmul.mubr.msk.f32.gmra.mrb[18].mxu1 %vm293_vm1, %v6025_v31  ;;  %5032 = vmatmul.mubr.msk.f32.gmra.mrb[2].mxu0 %vm293_vm1, %v5909_v7  ;;  %v6057_v7 = vld [vmem:[%s5554_s30 + $0x110] sm:$0xff] }
  0x7b   : > { %4808 = vmatprep.mubr.msk.f32.mxu1 %vm293_vm1, %v6030_v0  ;;  %5034 = vmatprep.mubr.msk.f32.mxu0 %vm293_vm1, %v5915_v10  ;;  %v6060_v10 = vld [vmem:[%s5554_s30 + $0x120] sm:$0xff] }
  0x7e   : > { %4809 = vmatmul.mubr.msk.f32.gmra.mrb[20].mxu1 %vm293_vm1, %v6043_v28  ;;  %5035 = vmatmul.mubr.msk.f32.gmra.mrb[4].mxu0 %vm293_vm1, %v5929_v57  ;;  %v6071_v57 = vld [vmem:[%s5554_s30 + $0x128] sm:$0xff] }
  0x7f   : > { %4811 = vmatprep.mubr.msk.f32.mxu1 %vm293_vm1, %v6046_v5  ;;  %5037 = vmatprep.mubr.msk.f32.mxu0 %vm293_vm1, %v5935_v51  ;;  %v6074_v51 = vld [vmem:[%s5554_s30 + $0x138] sm:$0xff] }
  0x82   : > { %4812 = vmatmul.mubr.msk.f32.gmra.mrb[22].mxu1 %vm293_vm1, %v6057_v7  ;;  %5038 = vmatmul.mubr.msk.f32.gmra.mrb[6].mxu0 %vm293_vm1, %v5949_v47  ;;  %v6085_v47 = vld [vmem:[%s5554_s30 + $0x140] sm:$0xff] }
  0x83   : > { %4814 = vmatprep.mubr.msk.f32.mxu1 %vm293_vm1, %v6060_v10  ;;  %5040 = vmatprep.mubr.msk.f32.mxu0 %vm293_vm1, %v5955_v43  ;;  %v6088_v43 = vld [vmem:[%s5554_s30 + $0x150] sm:$0xff] }
  0x86   : > { %4815 = vmatmul.mubr.msk.f32.gmra.mrb[24].mxu1 %vm293_vm1, %v6071_v57  ;;  %5041 = vmatmul.mubr.msk.f32.gmra.mrb[8].mxu0 %vm293_vm1, %v5969_v39  ;;  %v6099_v39 = vld [vmem:[%s5554_s30 + $0x158] sm:$0xff] }
  0x87   : > { %4817 = vmatprep.mubr.msk.f32.mxu1 %vm293_vm1, %v6074_v51  ;;  %5043 = vmatprep.mubr.msk.f32.mxu0 %vm293_vm1, %v5975_v35  ;;  %v6102_v35 = vld [vmem:[%s5554_s30 + $0x168] sm:$0xff] }
  0x8a   : > { %4818 = vmatmul.mubr.msk.f32.gmra.mrb[26].mxu1 %vm293_vm1, %v6085_v47  ;;  %5044 = vmatmul.mubr.msk.f32.gmra.mrb[10].mxu0 %vm293_vm1, %v5989_v62  ;;  %v6113_v62 = vld [vmem:[%s5554_s30 + $0x170] sm:$0xff] }
  0x8b   : > { %4820 = vmatprep.mubr.msk.f32.mxu1 %vm293_vm1, %v6088_v43  ;;  %5046 = vmatprep.mubr.msk.f32.mxu0 %vm293_vm1, %v5995_v59 }
  0x8e   : > { %4821 = vmatmul.mubr.msk.f32.gmra.mrb[28].mxu1 %vm293_vm1, %v6099_v39  ;;  %5047 = vmatmul.mubr.msk.f32.gmra.mrb[12].mxu0 %vm293_vm1, %v6006_v33  ;;  %v944_v33 = vld [vmem:[%s5554_s30 + $0xa] sm:$0xff] }
  0x8f   : > { %4823 = vmatprep.mubr.msk.f32.mxu1 %vm293_vm1, %v6102_v35  ;;  %5049 = vmatprep.mubr.msk.f32.mxu0 %vm293_vm1, %v6009_v29 }
  0x92   : > { %4824 = vmatmul.mubr.msk.f32.gmra.mrb[30].mxu1 %vm293_vm1, %v6113_v62  ;;  %5050 = vmatmul.mubr.msk.f32.gmra.mrb[14].mxu0 %vm293_vm1, %v6025_v31 }
  0x93   : > { %4828 = vmatprep.mubr.msk.f32.mxu1 %vm293_vm1, %v943_v3  ;;  %5052 = vmatprep.mubr.msk.f32.mxu0 %vm293_vm1, %v6030_v0  ;;  %v6727_v3 = vld [vmem:[#allocation22_spill] sm:$0xff] }
  0x96   : > { %4829 = vmatmul.mubr.msk.f32.vlgmr.msra.gmra.mrb[0].mxu1 %vm293_vm1, %v944_v33  ;;  %5053 = vmatmul.mubr.msk.f32.gmra.mrb[16].mxu0 %vm293_vm1, %v6043_v28  ;;  %v4256_v33 = vld [vmem:[%s5554_s30 + $0x198] sm:$0xff] }
  0x97   : > { %4877 = vmatpush3.msk.msra.mxu1 %vm390_vm0, %v5855_v61  ;;  %4831 = vmatprep.mubr.msk.f32.mxu1 %vm293_vm1, %v5670_v24  ;;  %v6168_v24 = vld [vmem:[%s5554_s30 + $0x180] sm:$0xff] }
  0x98   : > { %5055 = vmatprep.mubr.msk.f32.mxu0 %vm293_vm1, %v6046_v5  ;;  %5176 = vmatprep.subr.msk.mxu1 %vm390_vm0, %v5532_v1  ;;  %v4257_v61 = vld [vmem:[%s5554_s30 + $0x1a0] sm:$0xff] }
  0x9a   : > { %4832 = vmatmul.mubr.msk.f32.gmra.mrb[2].mxu1 %vm293_vm1, %v5681_v25  ;;  %5056 = vmatmul.mubr.msk.f32.gmra.mrb[18].mxu0 %vm293_vm1, %v6057_v7  ;;  %v6179_v25 = vld [vmem:[%s5554_s30 + $0x188] sm:$0xff] }
  0x9b   : > { %4834 = vmatprep.mubr.msk.f32.mxu1 %vm293_vm1, %v5687_v27  ;;  %5058 = vmatprep.mubr.msk.f32.mxu0 %vm293_vm1, %v6060_v10 }
  0x9e   : > { %4835 = vmatmul.mubr.msk.f32.gmra.mrb[4].mxu1 %vm293_vm1, %v5705_v30  ;;  %5059 = vmatmul.mubr.msk.f32.gmra.mrb[20].mxu0 %vm293_vm1, %v6071_v57 }
  0x9f   : > { %4837 = vmatprep.mubr.msk.f32.mxu1 %vm293_vm1, %v5713_v32  ;;  %5061 = vmatprep.mubr.msk.f32.mxu0 %vm293_vm1, %v6074_v51 }
  0xa2   : > { %4838 = vmatmul.mubr.msk.f32.gmra.mrb[6].mxu1 %vm293_vm1, %v5729_v34  ;;  %5062 = vmatmul.mubr.msk.f32.gmra.mrb[22].mxu0 %vm293_vm1, %v6085_v47 }
  0xa3   : > { %4840 = vmatprep.mubr.msk.f32.mxu1 %vm293_vm1, %v5735_v36  ;;  %5064 = vmatprep.mubr.msk.f32.mxu0 %vm293_vm1, %v6088_v43 }
  0xa6   : > { %4841 = vmatmul.mubr.msk.f32.gmra.mrb[8].mxu1 %vm293_vm1, %v5749_v38  ;;  %5065 = vmatmul.mubr.msk.f32.gmra.mrb[24].mxu0 %vm293_vm1, %v6099_v39 }
  0xa7   : > { %4843 = vmatprep.mubr.msk.f32.mxu1 %vm293_vm1, %v5755_v40  ;;  %5067 = vmatprep.mubr.msk.f32.mxu0 %vm293_vm1, %v6102_v35 }
  0xaa   : > { %4844 = vmatmul.mubr.msk.f32.gmra.mrb[10].mxu1 %vm293_vm1, %v5769_v42  ;;  %5068 = vmatmul.mubr.msk.f32.gmra.mrb[26].mxu0 %vm293_vm1, %v6113_v62 }
  0xab   : > { %4846 = vmatprep.mubr.msk.f32.mxu1 %vm293_vm1, %v5775_v44  ;;  %5070 = vmatprep.mubr.msk.f32.mxu0 %vm293_vm1, %v6168_v24 }
  0xae   : > { %4847 = vmatmul.mubr.msk.f32.gmra.mrb[12].mxu1 %vm293_vm1, %v5789_v46  ;;  %5071 = vmatmul.mubr.msk.f32.gmra.mrb[28].mxu0 %vm293_vm1, %v6179_v25 }
  0xaf   : > { %4849 = vmatprep.mubr.msk.f32.mxu1 %vm293_vm1, %v5795_v48  ;;  %5073 = vmatprep.mubr.msk.f32.mxu0 %vm293_vm1, %v4256_v33  ;;  %v6728_v33 = vld [vmem:[#allocation10_spill] sm:$0xff] }
  0xb2   : > { %4850 = vmatmul.mubr.msk.f32.gmra.mrb[14].mxu1 %vm293_vm1, %v5809_v50  ;;  %5074 = vmatmul.mubr.msk.f32.gmra.mrb[30].mxu0 %vm293_vm1, %v4257_v61  ;;  %v6729_v61 = vld [vmem:[#allocation23_spill] sm:$0xff] }
  0xb3   : > { %4852 = vmatprep.mubr.msk.f32.mxu1 %vm293_vm1, %v5815_v52  ;;  %5078 = vmatprep.mubr.msk.f32.mxu0 %vm293_vm1, %v5563_v8  ;;  %v6711_v8 = vld [vmem:[#allocation27_spill] sm:$0xff] }
  0xb6   : > { %4853 = vmatmul.mubr.msk.f32.gmra.mrb[16].mxu1 %vm293_vm1, %v5829_v54  ;;  %5079 = vmatmul.mubr.msk.f32.vlgmr.msra.gmra.mrb[0].mxu0 %vm293_vm1, %v5578_v11  ;;  %v6712_v11 = vld [vmem:[#allocation2_spill] sm:$0xff] }
  0xb7   : > { %5127 = vmatpush3.msk.msra.mxu0 %vm390_vm0, %v6014_v37  ;;  %4855 = vmatprep.mubr.msk.f32.mxu1 %vm293_vm1, %v5833_v56  ;;  %v6726_v37 = vld [vmem:[#allocation9_spill] sm:$0xff] }
  0xb8   : > { %5081 = vmatprep.mubr.msk.f32.mxu0 %vm293_vm1, %v5584_v12  ;;  %v6713_v12 = vld [vmem:[#allocation15_spill] sm:$0xff] }
  0xba   : > { %4856 = vmatmul.mubr.msk.f32.gmra.mrb[18].mxu1 %vm293_vm1, %v5844_v58  ;;  %5082 = vmatmul.mubr.msk.f32.gmra.mrb[2].mxu0 %vm293_vm1, %v5597_v13  ;;  %v6714_v13 = vld [vmem:[#allocation3_spill] sm:$0xff] }
  0xbb   : > { %4858 = vmatprep.mubr.msk.f32.mxu1 %vm293_vm1, %v5850_v60  ;;  %5084 = vmatprep.mubr.msk.f32.mxu0 %vm293_vm1, %v5600_v14  ;;  %v6715_v14 = vld [vmem:[#allocation16_spill] sm:$0xff] }
  0xbe   : > { %4859 = vmatmul.mubr.msk.f32.gmra.mrb[20].mxu1 %vm293_vm1, %v5868_v63  ;;  %5085 = vmatmul.mubr.msk.f32.gmra.mrb[4].mxu0 %vm293_vm1, %v5611_v15  ;;  %v6716_v15 = vld [vmem:[#allocation4_spill] sm:$0xff] }
  0xbf   : > { %4861 = vmatprep.mubr.msk.f32.mxu1 %vm293_vm1, %v5876_v2  ;;  %5087 = vmatprep.mubr.msk.f32.mxu0 %vm293_vm1, %v5614_v16  ;;  %v6717_v16 = vld [vmem:[#allocation17_spill] sm:$0xff] }
  0xc2   : > { %4862 = vmatmul.mubr.msk.f32.gmra.mrb[22].mxu1 %vm293_vm1, %v5892_v4  ;;  %5088 = vmatmul.mubr.msk.f32.gmra.mrb[6].mxu0 %vm293_vm1, %v5625_v17  ;;  %v6718_v17 = vld [vmem:[#allocation5_spill] sm:$0xff] }
  0xc3   : > { %4864 = vmatprep.mubr.msk.f32.mxu1 %vm293_vm1, %v5898_v6  ;;  %5090 = vmatprep.mubr.msk.f32.mxu0 %vm293_vm1, %v5628_v18  ;;  %v6719_v18 = vld [vmem:[#allocation18_spill] sm:$0xff] }
  0xc6   : > { %4865 = vmatmul.mubr.msk.f32.gmra.mrb[24].mxu1 %vm293_vm1, %v5912_v9  ;;  %5091 = vmatmul.mubr.msk.f32.gmra.mrb[8].mxu0 %vm293_vm1, %v5639_v19  ;;  %v6720_v19 = vld [vmem:[#allocation6_spill] sm:$0xff] }
  0xc7   : > { %4867 = vmatprep.mubr.msk.f32.mxu1 %vm293_vm1, %v5918_v55  ;;  %5093 = vmatprep.mubr.msk.f32.mxu0 %vm293_vm1, %v5642_v20  ;;  %v6721_v20 = vld [vmem:[#allocation19_spill] sm:$0xff] }
  0xca   : > { %4868 = vmatmul.mubr.msk.f32.gmra.mrb[26].mxu1 %vm293_vm1, %v5932_v53  ;;  %5094 = vmatmul.mubr.msk.f32.gmra.mrb[10].mxu0 %vm293_vm1, %v5653_v21  ;;  %v6722_v21 = vld [vmem:[#allocation7_spill] sm:$0xff] }
  0xcb   : > { %4870 = vmatprep.mubr.msk.f32.mxu1 %vm293_vm1, %v5938_v49  ;;  %5096 = vmatprep.mubr.msk.f32.mxu0 %vm293_vm1, %v5656_v22  ;;  %v6724_v22 = vld [vmem:[#allocation8_spill] sm:$0xff] }
  0xce   : > { %4871 = vmatmul.mubr.msk.f32.gmra.mrb[28].mxu1 %vm293_vm1, %v5952_v45  ;;  %5097 = vmatmul.mubr.msk.f32.gmra.mrb[12].mxu0 %vm293_vm1, %v5667_v23  ;;  %v6725_v23 = vld [vmem:[#allocation21_spill] sm:$0xff] }
  0xcf   : > { %4873 = vmatprep.mubr.msk.f32.mxu1 %vm293_vm1, %v5958_v41  ;;  %5099 = vmatprep.mubr.msk.f32.mxu0 %vm293_vm1, %v5684_v26 }
  0xd2   : > { %4874 = vmatmul.mubr.msk.f32.gmra.mrb[30].mxu1 %vm293_vm1, %v6711_v8  ;;  %5100 = vmatmul.mubr.msk.f32.gmra.mrb[14].mxu0 %vm293_vm1, %v6712_v11  ;;  %v6738_v8 = vld [vmem:[#allocation30_spill] sm:$0xff] }
  0xd3   : > { %4878 = vmatprep.mubr.msk.f32.mxu1 %vm293_vm1, %v6713_v12  ;;  %5102 = vmatprep.mubr.msk.f32.mxu0 %vm293_vm1, %v6714_v13  ;;  %v6730_v12 = vld [vmem:[#allocation11_spill] sm:$0xff] }
  0xd6   : > { %4879 = vmatmul.mubr.msk.f32.vlgmr.msra.gmra.mrb[0].mxu1 %vm293_vm1, %v6715_v14  ;;  %5103 = vmatmul.mubr.msk.f32.gmra.mrb[16].mxu0 %vm293_vm1, %v6716_v15  ;;  %v6731_v14 = vld [vmem:[#allocation24_spill] sm:$0xff] }
  0xd7   : > { %5177 = vmatpush3.msk.msra.mxu1 %vm390_vm0, %v5532_v1  ;;  %4881 = vmatprep.mubr.msk.f32.mxu1 %vm293_vm1, %v6717_v16  ;;  %v6723_v1 = vld [vmem:[#allocation20_spill] sm:$0xff] }
  0xd8   : > { %5105 = vmatprep.mubr.msk.f32.mxu0 %vm293_vm1, %v6718_v17  ;;  %v6732_v16 = vld [vmem:[#allocation12_spill] sm:$0xff] }
  0xda   : > { %4882 = vmatmul.mubr.msk.f32.gmra.mrb[2].mxu1 %vm293_vm1, %v6719_v18  ;;  %5106 = vmatmul.mubr.msk.f32.gmra.mrb[18].mxu0 %vm293_vm1, %v6720_v19  ;;  %v6733_v18 = vld [vmem:[#allocation25_spill] sm:$0xff] }
  0xdb   : > { %4884 = vmatprep.mubr.msk.f32.mxu1 %vm293_vm1, %v6721_v20  ;;  %5108 = vmatprep.mubr.msk.f32.mxu0 %vm293_vm1, %v6722_v21  ;;  %v6734_v20 = vld [vmem:[#allocation13_spill] sm:$0xff] }
  0xde   : > { %4885 = vmatmul.mubr.msk.f32.gmra.mrb[4].mxu1 %vm293_vm1, %v6723_v1  ;;  %5109 = vmatmul.mubr.msk.f32.gmra.mrb[20].mxu0 %vm293_vm1, %v6724_v22  ;;  %v6306_v1 = vld [vmem:[%s5554_s30 + $0x181] sm:$0xff] }
  0xdf   : > { %4887 = vmatprep.mubr.msk.f32.mxu1 %vm293_vm1, %v6725_v23  ;;  %5111 = vmatprep.mubr.msk.f32.mxu0 %vm293_vm1, %v6726_v37  ;;  %v6735_v23 = vld [vmem:[#allocation26_spill] sm:$0xff] }
  0xe2   : > { %4888 = vmatmul.mubr.msk.f32.gmra.mrb[6].mxu1 %vm293_vm1, %v6727_v3  ;;  %5112 = vmatmul.mubr.msk.f32.gmra.mrb[22].mxu0 %vm293_vm1, %v6728_v33  ;;  %v6736_v3 = vld [vmem:[#allocation14_spill] sm:$0xff] }
  0xe3   : > { %4890 = vmatprep.mubr.msk.f32.mxu1 %vm293_vm1, %v6729_v61  ;;  %5114 = vmatprep.mubr.msk.f32.mxu0 %vm293_vm1, %v6730_v12  ;;  %v6737_v61 = vld [vmem:[#allocation28_spill] sm:$0xff] }
  0xe6   : > { %4891 = vmatmul.mubr.msk.f32.gmra.mrb[8].mxu1 %vm293_vm1, %v6731_v14  ;;  %5115 = vmatmul.mubr.msk.f32.gmra.mrb[24].mxu0 %vm293_vm1, %v6732_v16  ;;  %v6317_v14 = vld [vmem:[%s5554_s30 + $0x189] sm:$0xff] }
  0xe7   : > { %4893 = vmatprep.mubr.msk.f32.mxu1 %vm293_vm1, %v6733_v18  ;;  %5117 = vmatprep.mubr.msk.f32.mxu0 %vm293_vm1, %v6734_v20  ;;  %v4322_v18 = vld [vmem:[%s5554_s30 + $0x199] sm:$0xff] }
  0xea   : > { %4894 = vmatmul.mubr.msk.f32.gmra.mrb[10].mxu1 %vm293_vm1, %v6735_v23  ;;  %5118 = vmatmul.mubr.msk.f32.gmra.mrb[26].mxu0 %vm293_vm1, %v6736_v3  ;;  %v4323_v23 = vld [vmem:[%s5554_s30 + $0x1a1] sm:$0xff]  ;;  %v6739_v3 = vld [vmem:[#allocation32_spill] sm:$0xff] }
  0xeb   : > { %4896 = vmatprep.mubr.msk.f32.mxu1 %vm293_vm1, %v6737_v61  ;;  %5120 = vmatprep.mubr.msk.f32.mxu0 %vm293_vm1, %v6306_v1 }
  0xee   : > { %4897 = vmatmul.mubr.msk.f32.gmra.mrb[12].mxu1 %vm293_vm1, %v6738_v8  ;;  %5121 = vmatmul.mubr.msk.f32.gmra.mrb[28].mxu0 %vm293_vm1, %v6317_v14 }
  0xef   : > { %4899 = vmatprep.mubr.msk.f32.mxu1 %vm293_vm1, %v5995_v59  ;;  %5123 = vmatprep.mubr.msk.f32.mxu0 %vm293_vm1, %v4322_v18 }
  0xf2   : > { %4900 = vmatmul.mubr.msk.f32.gmra.mrb[14].mxu1 %vm293_vm1, %v6739_v3  ;;  %5124 = vmatmul.mubr.msk.f32.gmra.mrb[30].mxu0 %vm293_vm1, %v4323_v23 }
  0xf3   : > { %4902 = vmatprep.mubr.msk.f32.mxu1 %vm293_vm1, %v6009_v29  ;;  %5128 = vmatprep.mubr.msk.f32.mxu0 %vm293_vm1, %v5687_v27  ;;  %v6741_v27 = vld [vmem:[#allocation29_spill] sm:$0xff] }
  0xf4   : > { %v4388_v29 = vld [vmem:[%s5554_s30 + $0x19a] sm:$0xff] }
  0xf6   : > { %4903 = vmatmul.mubr.msk.f32.gmra.mrb[16].mxu1 %vm293_vm1, %v6025_v31  ;;  %5129 = vmatmul.mubr.msk.f32.vlgmr.msra.gmra.mrb[0].mxu0 %vm293_vm1, %v5705_v30  ;;  %v6742_v30 = vld [vmem:[#allocation14_spill] sm:$0xff]  ;;  %v6743_v31 = vld [vmem:[#allocation31_spill] sm:$0xff] }
  0xf7   : > { %4905 = vmatprep.mubr.msk.f32.mxu1 %vm293_vm1, %v6030_v0  ;;  %5131 = vmatprep.mubr.msk.f32.mxu0 %vm293_vm1, %v5713_v32  ;;  %v4389_v32 = vld [vmem:[%s5554_s30 + $0x1a2] sm:$0xff] }
  0xfa   : > { %4906 = vmatmul.mubr.msk.f32.gmra.mrb[18].mxu1 %vm293_vm1, %v6043_v28  ;;  %5132 = vmatmul.mubr.msk.f32.gmra.mrb[2].mxu0 %vm293_vm1, %v5729_v34 }
  0xfb   : > { %4908 = vmatprep.mubr.msk.f32.mxu1 %vm293_vm1, %v6046_v5  ;;  %5134 = vmatprep.mubr.msk.f32.mxu0 %vm293_vm1, %v5735_v36 }
  0xfe   : > { %4909 = vmatmul.mubr.msk.f32.gmra.mrb[20].mxu1 %vm293_vm1, %v6057_v7  ;;  %5135 = vmatmul.mubr.msk.f32.gmra.mrb[4].mxu0 %vm293_vm1, %v5749_v38 }
  0xff   : > { %4911 = vmatprep.mubr.msk.f32.mxu1 %vm293_vm1, %v6060_v10  ;;  %5137 = vmatprep.mubr.msk.f32.mxu0 %vm293_vm1, %v5755_v40 }
 0x102   : > { %4912 = vmatmul.mubr.msk.f32.gmra.mrb[22].mxu1 %vm293_vm1, %v6071_v57  ;;  %5138 = vmatmul.mubr.msk.f32.gmra.mrb[6].mxu0 %vm293_vm1, %v5769_v42 }
 0x103   : > { %4914 = vmatprep.mubr.msk.f32.mxu1 %vm293_vm1, %v6074_v51  ;;  %5140 = vmatprep.mubr.msk.f32.mxu0 %vm293_vm1, %v5775_v44 }
 0x106   : > { %4915 = vmatmul.mubr.msk.f32.gmra.mrb[24].mxu1 %vm293_vm1, %v6085_v47  ;;  %5141 = vmatmul.mubr.msk.f32.gmra.mrb[8].mxu0 %vm293_vm1, %v5789_v46 }
 0x107   : > { %4917 = vmatprep.mubr.msk.f32.mxu1 %vm293_vm1, %v6088_v43  ;;  %5143 = vmatprep.mubr.msk.f32.mxu0 %vm293_vm1, %v5795_v48 }
 0x10a   : > { %4918 = vmatmul.mubr.msk.f32.gmra.mrb[26].mxu1 %vm293_vm1, %v6099_v39  ;;  %5144 = vmatmul.mubr.msk.f32.gmra.mrb[10].mxu0 %vm293_vm1, %v5809_v50 }
 0x10b   : > { %4920 = vmatprep.mubr.msk.f32.mxu1 %vm293_vm1, %v6102_v35  ;;  %5146 = vmatprep.mubr.msk.f32.mxu0 %vm293_vm1, %v5815_v52  ;;  %v6474_v52 = vld [vmem:[%s6632_s2] ss:$0 sm:$0xff] }
 0x10e   : > { %4921 = vmatmul.mubr.msk.f32.gmra.mrb[28].mxu1 %vm293_vm1, %v6113_v62  ;;  %5147 = vmatmul.mubr.msk.f32.gmra.mrb[12].mxu0 %vm293_vm1, %v5829_v54 }
 0x10f   : > { %4923 = vmatprep.mubr.msk.f32.mxu1 %vm293_vm1, %v6168_v24  ;;  %5149 = vmatprep.mubr.msk.f32.mxu0 %vm293_vm1, %v5833_v56  ;;  %v6479_v56 = vld [vmem:[%s6633_s3] ss:$0 sm:$0xff] }
 0x112   : > { %4924 = vmatmul.mubr.msk.f32.gmra.mrb[30].mxu1 %vm293_vm1, %v6179_v25  ;;  %5150 = vmatmul.mubr.msk.f32.gmra.mrb[14].mxu0 %vm293_vm1, %v5844_v58 }
 0x113   : > { %4952 = vmatprep.mubr.msk.f32.mxu1 %vm293_vm1, %v5684_v26  ;;  %5152 = vmatprep.mubr.msk.f32.mxu0 %vm293_vm1, %v5850_v60  ;;  %v6740_v26 = vld [vmem:[#allocation27_spill] sm:$0xff] }
 0x116   : > { %4953 = vmatmul.mubr.msk.f32.vlgmr.msra.gmra.mrb[16].mxu1 %vm293_vm1, %v6712_v11  ;;  %5153 = vmatmul.mubr.msk.f32.gmra.mrb[16].mxu0 %vm293_vm1, %v5868_v63 }
 0x117   : > { %4955 = vmatprep.mubr.msk.f32.mxu1 %vm293_vm1, %v6714_v13  ;;  %5155 = vmatprep.mubr.msk.f32.mxu0 %vm293_vm1, %v5876_v2 }
 0x11a   : > { %4956 = vmatmul.mubr.msk.f32.gmra.mrb[18].mxu1 %vm293_vm1, %v6716_v15  ;;  %5156 = vmatmul.mubr.msk.f32.gmra.mrb[18].mxu0 %vm293_vm1, %v5892_v4 }
 0x11b   : > { %4958 = vmatprep.mubr.msk.f32.mxu1 %vm293_vm1, %v6718_v17  ;;  %5158 = vmatprep.mubr.msk.f32.mxu0 %vm293_vm1, %v5898_v6 }
 0x11e   : > { %4959 = vmatmul.mubr.msk.f32.gmra.mrb[20].mxu1 %vm293_vm1, %v6720_v19  ;;  %5159 = vmatmul.mubr.msk.f32.gmra.mrb[20].mxu0 %vm293_vm1, %v5912_v9 }
 0x11f   : > { %4961 = vmatprep.mubr.msk.f32.mxu1 %vm293_vm1, %v6722_v21  ;;  %5161 = vmatprep.mubr.msk.f32.mxu0 %vm293_vm1, %v5918_v55 }
 0x122   : > { %4962 = vmatmul.mubr.msk.f32.gmra.mrb[22].mxu1 %vm293_vm1, %v6724_v22  ;;  %5162 = vmatmul.mubr.msk.f32.gmra.mrb[22].mxu0 %vm293_vm1, %v5932_v53 }
 0x123   : > { %4964 = vmatprep.mubr.msk.f32.mxu1 %vm293_vm1, %v6726_v37  ;;  %5164 = vmatprep.mubr.msk.f32.mxu0 %vm293_vm1, %v5938_v49 }
 0x126   : > { %4965 = vmatmul.mubr.msk.f32.gmra.mrb[24].mxu1 %vm293_vm1, %v6728_v33  ;;  %5165 = vmatmul.mubr.msk.f32.gmra.mrb[24].mxu0 %vm293_vm1, %v5952_v45 }
 0x127   : > { %4967 = vmatprep.mubr.msk.f32.mxu1 %vm293_vm1, %v6730_v12  ;;  %5167 = vmatprep.mubr.msk.f32.mxu0 %vm293_vm1, %v5958_v41 }
 0x12a   : > { %4968 = vmatmul.mubr.msk.f32.gmra.mrb[26].mxu1 %vm293_vm1, %v6732_v16  ;;  %5168 = vmatmul.mubr.msk.f32.gmra.mrb[26].mxu0 %vm293_vm1, %v6740_v26 }
 0x12b   : > { %4970 = vmatprep.mubr.msk.f32.mxu1 %vm293_vm1, %v6734_v20  ;;  %5170 = vmatprep.mubr.msk.f32.mxu0 %vm293_vm1, %v6741_v27 }
 0x12e   : > { %4971 = vmatmul.mubr.msk.f32.gmra.mrb[28].mxu1 %vm293_vm1, %v6742_v30  ;;  %5171 = vmatmul.mubr.msk.f32.gmra.mrb[28].mxu0 %vm293_vm1, %v6743_v31 }
 0x12f   : > { %4973 = vmatprep.mubr.msk.f32.mxu1 %vm293_vm1, %v6306_v1  ;;  %5173 = vmatprep.mubr.msk.f32.mxu0 %vm293_vm1, %v4388_v29 }
 0x132   : > { %4974 = vmatmul.mubr.msk.f32.gmra.mrb[30].mxu1 %vm293_vm1, %v6317_v14  ;;  %5174 = vmatmul.mubr.msk.f32.gmra.mrb[30].mxu0 %vm293_vm1, %v4389_v32 }
 0x1a9   : > { %v4880_v34 = vpop.f32.mrb[0].mxu1 }
 0x1aa   : > { %v1535_v35 = vpop.f32.mrb[1].mxu1 }
 0x1ad   : > { %v4883_v36 = vpop.f32.mrb[2].mxu1 }
 0x1ae   : > { %v1545_v38 = vpop.f32.mrb[3].mxu1 }
 0x1b1   : > { %v4886_v39 = vpop.f32.mrb[4].mxu1 }
 0x1b2   : > { %v1555_v40 = vpop.f32.mrb[5].mxu1 }
 0x1b5   : > { %v4889_v41 = vpop.f32.mrb[6].mxu1 }
 0x1b6   : > { %v1565_v42 = vpop.f32.mrb[7].mxu1 }
 0x1b9   : > { %v4892_v43 = vpop.f32.mrb[8].mxu1 }
 0x1ba   : > { %v1575_v44 = vpop.f32.mrb[9].mxu1 }
 0x1bd   : > { %v6459_v45 = vpop.f32.mrb[10].mxu1 }
 0x1be   : > { %v6461_v46 = vpop.f32.mrb[11].mxu1 }
 0x1c1   : > { %v6463_v47 = vpop.f32.mrb[12].mxu1 }
 0x1c2   : > { %v6465_v48 = vpop.f32.mrb[13].mxu1 }
 0x1c5   : > { %v6467_v49 = vpop.f32.mrb[14].mxu1 }
 0x1c6   : > { %v6469_v50 = vpop.f32.mrb[15].mxu1 }
 0x1c9   : > { %v5130_v51 = vpop.f32.mrb[0].mxu0 }
 0x1ca   : > { %v5178_v53 = vadd.f32 %v5130_v51, %v4880_v34  ;;  %v3488_v54 = vpop.f32.mrb[1].mxu0 }
 0x1cb   : > { %v5179_v58 = vadd.f32 %v3488_v54, %v1535_v35 }
 0x1cc   : > { %v3687_v59 = vmul.f32 %v5178_v53, %v6474_v52 }
 0x1cd   : > { %v3686_v60 = vmul.f32 %v5179_v58, %v6474_v52  ;;  %v5133_v62 = vpop.f32.mrb[2].mxu0 }
 0x1ce   : > { %v3726_v63 = vadd.f32 %v6479_v56, %v3687_v59  ;;  %v5180_v0 = vadd.f32 %v5133_v62, %v4883_v36  ;;  %v3498_v2 = vpop.f32.mrb[3].mxu0 }
 0x1cf   : > { %v3725_v4 = vadd.f32 %v6479_v56, %v3686_v60  ;;  %v5181_v5 = vadd.f32 %v3498_v2, %v1545_v38 }
 0x1d0   : > { %v3758_v6 = vmax.f32 %v3726_v63, 0.0  ;;  %v3689_v7 = vmul.f32 %v5180_v0, %v6474_v52 }
 0x1d1   : > { %v3757_v9 = vmax.f32 %v3725_v4, 0.0  ;;  %v3688_v10 = vmul.f32 %v5181_v5, %v6474_v52  ;;  %v5136_v55 = vpop.f32.mrb[4].mxu0 }
 0x1d2   : > { %3791 = vst.msk [vmem:[%s6488_s26 + $0x8] sm:$0xff] %vm3789_vm2, %v3758_v6  ;;  %v3728_v57 = vadd.f32 %v6479_v56, %v3689_v7  ;;  %v5182_v28 = vadd.f32 %v5136_v55, %v4886_v39  ;;  %v3508_v24 = vpop.f32.mrb[5].mxu0 }
 0x1d3   : > { %3790 = vst.msk [vmem:[%s6488_s26] sm:$0xff] %vm3789_vm2, %v3757_v9  ;;  %v3727_v25 = vadd.f32 %v6479_v56, %v3688_v10  ;;  %v5183_v8 = vadd.f32 %v3508_v24, %v1555_v40 }
 0x1d4   : > { %v3760_v11 = vmax.f32 %v3728_v57, 0.0  ;;  %v3691_v13 = vmul.f32 %v5182_v28, %v6474_v52 }
 0x1d5   : > { %v3759_v15 = vmax.f32 %v3727_v25, 0.0  ;;  %v3690_v17 = vmul.f32 %v5183_v8, %v6474_v52  ;;  %v5139_v19 = vpop.f32.mrb[6].mxu0 }
 0x1d6   : > { %3793 = vst.msk [vmem:[%s6488_s26 + $0x18] sm:$0xff] %vm3789_vm2, %v3760_v11  ;;  %v3730_v21 = vadd.f32 %v6479_v56, %v3691_v13  ;;  %v5184_v22 = vadd.f32 %v5139_v19, %v4889_v41  ;;  %v3518_v37 = vpop.f32.mrb[7].mxu0 }
 0x1d7   : > { %3792 = vst.msk [vmem:[%s6488_s26 + $0x10] sm:$0xff] %vm3789_vm2, %v3759_v15  ;;  %v3729_v33 = vadd.f32 %v6479_v56, %v3690_v17  ;;  %v5185_v12 = vadd.f32 %v3518_v37, %v1565_v42 }
 0x1d8   : > { %v3762_v16 = vmax.f32 %v3730_v21, 0.0  ;;  %v3693_v20 = vmul.f32 %v5184_v22, %v6474_v52 }
 0x1d9   : > { %v3761_v1 = vmax.f32 %v3729_v33, 0.0  ;;  %v3692_v3 = vmul.f32 %v5185_v12, %v6474_v52  ;;  %v5142_v61 = vpop.f32.mrb[8].mxu0 }
 0x1da   : > { %3795 = vst.msk [vmem:[%s6488_s26 + $0x28] sm:$0xff] %vm3789_vm2, %v3762_v16  ;;  %v3732_v14 = vadd.f32 %v6479_v56, %v3693_v20  ;;  %v5186_v18 = vadd.f32 %v5142_v61, %v4892_v43  ;;  %v3528_v23 = vpop.f32.mrb[9].mxu0 }
 0x1db   : > { %3794 = vst.msk [vmem:[%s6488_s26 + $0x20] sm:$0xff] %vm3789_vm2, %v3761_v1  ;;  %v3731_v26 = vadd.f32 %v6479_v56, %v3692_v3  ;;  %v5187_v27 = vadd.f32 %v3528_v23, %v1575_v44 }
 0x1dc   : > { %v3764_v29 = vmax.f32 %v3732_v14, 0.0  ;;  %v3695_v30 = vmul.f32 %v5186_v18, %v6474_v52 }
 0x1dd   : > { %v3763_v31 = vmax.f32 %v3731_v26, 0.0  ;;  %v3694_v32 = vmul.f32 %v5187_v27, %v6474_v52  ;;  %v5145_v34 = vpop.f32.mrb[10].mxu0 }
 0x1de   : > { %3797 = vst.msk [vmem:[%s6488_s26 + $0x38] sm:$0xff] %vm3789_vm2, %v3764_v29  ;;  %v3734_v35 = vadd.f32 %v6479_v56, %v3695_v30  ;;  %v5188_v36 = vadd.f32 %v5145_v34, %v6459_v45  ;;  %v3538_v38 = vpop.f32.mrb[11].mxu0 }
 0x1df   : > { %3796 = vst.msk [vmem:[%s6488_s26 + $0x30] sm:$0xff] %vm3789_vm2, %v3763_v31  ;;  %v3733_v39 = vadd.f32 %v6479_v56, %v3694_v32  ;;  %v5189_v40 = vadd.f32 %v3538_v38, %v6461_v46 }
 0x1e0   : > { %v3766_v41 = vmax.f32 %v3734_v35, 0.0  ;;  %v3697_v42 = vmul.f32 %v5188_v36, %v6474_v52 }
 0x1e1   : > { %v3765_v43 = vmax.f32 %v3733_v39, 0.0  ;;  %v3696_v44 = vmul.f32 %v5189_v40, %v6474_v52  ;;  %v5148_v51 = vpop.f32.mrb[12].mxu0 }
 0x1e2   : > { %3799 = vst.msk [vmem:[%s6488_s26 + $0x48] sm:$0xff] %vm3789_vm2, %v3766_v41  ;;  %v3736_v45 = vadd.f32 %v6479_v56, %v3697_v42  ;;  %v5190_v53 = vadd.f32 %v5148_v51, %v6463_v47  ;;  %v3548_v54 = vpop.f32.mrb[13].mxu0 }
 0x1e3   : > { %3798 = vst.msk [vmem:[%s6488_s26 + $0x40] sm:$0xff] %vm3789_vm2, %v3765_v43  ;;  %v3735_v46 = vadd.f32 %v6479_v56, %v3696_v44  ;;  %v5191_v58 = vadd.f32 %v3548_v54, %v6465_v48 }
 0x1e4   : > { %v3768_v59 = vmax.f32 %v3736_v45, 0.0  ;;  %v3699_v60 = vmul.f32 %v5190_v53, %v6474_v52 }
 0x1e5   : > { %v3767_v62 = vmax.f32 %v3735_v46, 0.0  ;;  %v3698_v63 = vmul.f32 %v5191_v58, %v6474_v52  ;;  %v5151_v0 = vpop.f32.mrb[14].mxu0 }
 0x1e6   : > { %3801 = vst.msk [vmem:[%s6488_s26 + $0x58] sm:$0xff] %vm3789_vm2, %v3768_v59  ;;  %v3738_v2 = vadd.f32 %v6479_v56, %v3699_v60  ;;  %v5192_v47 = vadd.f32 %v5151_v0, %v6467_v49  ;;  %v3558_v4 = vpop.f32.mrb[15].mxu0 }
 0x1e7   : > { %3800 = vst.msk [vmem:[%s6488_s26 + $0x50] sm:$0xff] %vm3789_vm2, %v3767_v62  ;;  %v3737_v48 = vadd.f32 %v6479_v56, %v3698_v63  ;;  %v5193_v5 = vadd.f32 %v3558_v4, %v6469_v50 }
 0x1e8   : > { %v3770_v6 = vmax.f32 %v3738_v2, 0.0  ;;  %v3701_v7 = vmul.f32 %v5192_v47, %v6474_v52 }
 0x1e9   : > { %v3769_v9 = vmax.f32 %v3737_v48, 0.0  ;;  %v3700_v10 = vmul.f32 %v5193_v5, %v6474_v52  ;;  %v4954_v55 = vpop.f32.mrb[16].mxu1  ;;  %v5154_v57 = vpop.f32.mrb[16].mxu0 }
 0x1ea   : > { %3803 = vst.msk [vmem:[%s6488_s26 + $0x68] sm:$0xff] %vm3789_vm2, %v3770_v6  ;;  %v3740_v49 = vadd.f32 %v6479_v56, %v3701_v7  ;;  %v5194_v28 = vadd.f32 %v5154_v57, %v4954_v55  ;;  %v2005_v24 = vpop.f32.mrb[17].mxu1  ;;  %v3568_v25 = vpop.f32.mrb[17].mxu0 }
 0x1eb   : > { %3802 = vst.msk [vmem:[%s6488_s26 + $0x60] sm:$0xff] %vm3789_vm2, %v3769_v9  ;;  %v3739_v50 = vadd.f32 %v6479_v56, %v3700_v10  ;;  %v5195_v8 = vadd.f32 %v3568_v25, %v2005_v24 }
 0x1ec   : > { %v3772_v11 = vmax.f32 %v3740_v49, 0.0  ;;  %v3703_v13 = vmul.f32 %v5194_v28, %v6474_v52 }
 0x1ed   : > { %v3771_v15 = vmax.f32 %v3739_v50, 0.0  ;;  %v3702_v17 = vmul.f32 %v5195_v8, %v6474_v52  ;;  %v4957_v19 = vpop.f32.mrb[18].mxu1  ;;  %v5157_v21 = vpop.f32.mrb[18].mxu0 }
 0x1ee   : > { %3805 = vst.msk [vmem:[%s6488_s26 + $0x78] sm:$0xff] %vm3789_vm2, %v3772_v11  ;;  %v3742_v22 = vadd.f32 %v6479_v56, %v3703_v13  ;;  %v5196_v37 = vadd.f32 %v5157_v21, %v4957_v19  ;;  %v2015_v33 = vpop.f32.mrb[19].mxu1  ;;  %v3578_v12 = vpop.f32.mrb[19].mxu0 }
 0x1ef   : > { %3804 = vst.msk [vmem:[%s6488_s26 + $0x70] sm:$0xff] %vm3789_vm2, %v3771_v15  ;;  %v3741_v16 = vadd.f32 %v6479_v56, %v3702_v17  ;;  %v5197_v20 = vadd.f32 %v3578_v12, %v2015_v33 }
 0x1f0   : > { %v3774_v1 = vmax.f32 %v3742_v22, 0.0  ;;  %v3705_v3 = vmul.f32 %v5196_v37, %v6474_v52 }
 0x1f1   : > { %v3773_v61 = vmax.f32 %v3741_v16, 0.0  ;;  %v3704_v14 = vmul.f32 %v5197_v20, %v6474_v52  ;;  %v4960_v18 = vpop.f32.mrb[20].mxu1  ;;  %v5160_v23 = vpop.f32.mrb[20].mxu0 }
 0x1f2   : > { %3807 = vst.msk [vmem:[%s6488_s26 + $0x88] sm:$0xff] %vm3789_vm2, %v3774_v1  ;;  %v3744_v26 = vadd.f32 %v6479_v56, %v3705_v3  ;;  %v5198_v27 = vadd.f32 %v5160_v23, %v4960_v18  ;;  %v2025_v29 = vpop.f32.mrb[21].mxu1  ;;  %v3588_v30 = vpop.f32.mrb[21].mxu0 }
 0x1f3   : > { %3806 = vst.msk [vmem:[%s6488_s26 + $0x80] sm:$0xff] %vm3789_vm2, %v3773_v61  ;;  %v3743_v31 = vadd.f32 %v6479_v56, %v3704_v14  ;;  %v5199_v32 = vadd.f32 %v3588_v30, %v2025_v29 }
 0x1f4   : > { %v3776_v34 = vmax.f32 %v3744_v26, 0.0  ;;  %v3707_v35 = vmul.f32 %v5198_v27, %v6474_v52 }
 0x1f5   : > { %v3775_v36 = vmax.f32 %v3743_v31, 0.0  ;;  %v3706_v38 = vmul.f32 %v5199_v32, %v6474_v52  ;;  %v4963_v39 = vpop.f32.mrb[22].mxu1  ;;  %v5163_v40 = vpop.f32.mrb[22].mxu0 }
 0x1f6   : > { %3809 = vst.msk [vmem:[%s6488_s26 + $0x98] sm:$0xff] %vm3789_vm2, %v3776_v34  ;;  %v3746_v41 = vadd.f32 %v6479_v56, %v3707_v35  ;;  %v5200_v42 = vadd.f32 %v5163_v40, %v4963_v39  ;;  %v2035_v43 = vpop.f32.mrb[23].mxu1  ;;  %v3598_v44 = vpop.f32.mrb[23].mxu0 }
 0x1f7   : > { %3808 = vst.msk [vmem:[%s6488_s26 + $0x90] sm:$0xff] %vm3789_vm2, %v3775_v36  ;;  %v3745_v51 = vadd.f32 %v6479_v56, %v3706_v38  ;;  %v5201_v45 = vadd.f32 %v3598_v44, %v2035_v43 }
 0x1f8   : > { %v3778_v53 = vmax.f32 %v3746_v41, 0.0  ;;  %v3709_v54 = vmul.f32 %v5200_v42, %v6474_v52 }
 0x1f9   : > { %v3777_v46 = vmax.f32 %v3745_v51, 0.0  ;;  %v3708_v58 = vmul.f32 %v5201_v45, %v6474_v52  ;;  %v4966_v59 = vpop.f32.mrb[24].mxu1  ;;  %v5166_v60 = vpop.f32.mrb[24].mxu0 }
 0x1fa   : > { %3811 = vst.msk [vmem:[%s6488_s26 + $0xa8] sm:$0xff] %vm3789_vm2, %v3778_v53  ;;  %v3748_v62 = vadd.f32 %v6479_v56, %v3709_v54  ;;  %v5202_v63 = vadd.f32 %v5166_v60, %v4966_v59  ;;  %v2045_v0 = vpop.f32.mrb[25].mxu1  ;;  %v3608_v2 = vpop.f32.mrb[25].mxu0 }
 0x1fb   : > { %3810 = vst.msk [vmem:[%s6488_s26 + $0xa0] sm:$0xff] %vm3789_vm2, %v3777_v46  ;;  %v3747_v47 = vadd.f32 %v6479_v56, %v3708_v58  ;;  %v5203_v4 = vadd.f32 %v3608_v2, %v2045_v0 }
 0x1fc   : > { %v3780_v48 = vmax.f32 %v3748_v62, 0.0  ;;  %v3711_v5 = vmul.f32 %v5202_v63, %v6474_v52 }
 0x1fd   : > { %v3779_v6 = vmax.f32 %v3747_v47, 0.0  ;;  %v3710_v7 = vmul.f32 %v5203_v4, %v6474_v52  ;;  %v4969_v9 = vpop.f32.mrb[26].mxu1  ;;  %v5169_v10 = vpop.f32.mrb[26].mxu0 }
 0x1fe   : > { %3813 = vst.msk [vmem:[%s6488_s26 + $0xb8] sm:$0xff] %vm3789_vm2, %v3780_v48  ;;  %v3750_v55 = vadd.f32 %v6479_v56, %v3711_v5  ;;  %v5204_v57 = vadd.f32 %v5169_v10, %v4969_v9  ;;  %v2055_v49 = vpop.f32.mrb[27].mxu1  ;;  %v3618_v28 = vpop.f32.mrb[27].mxu0 }
 0x1ff   : > { %3812 = vst.msk [vmem:[%s6488_s26 + $0xb0] sm:$0xff] %vm3789_vm2, %v3779_v6  ;;  %v3749_v24 = vadd.f32 %v6479_v56, %v3710_v7  ;;  %v5205_v25 = vadd.f32 %v3618_v28, %v2055_v49 }
 0x200   : > { %v3782_v50 = vmax.f32 %v3750_v55, 0.0  ;;  %v3713_v8 = vmul.f32 %v5204_v57, %v6474_v52 }
 0x201   : > { %v3781_v11 = vmax.f32 %v3749_v24, 0.0  ;;  %v3712_v13 = vmul.f32 %v5205_v25, %v6474_v52  ;;  %v4972_v15 = vpop.f32.mrb[28].mxu1  ;;  %v5172_v17 = vpop.f32.mrb[28].mxu0 }
 0x202   : > { %3815 = vst.msk [vmem:[%s6488_s26 + $0xc8] sm:$0xff] %vm3789_vm2, %v3782_v50  ;;  %v3752_v19 = vadd.f32 %v6479_v56, %v3713_v8  ;;  %v5206_v21 = vadd.f32 %v5172_v17, %v4972_v15  ;;  %v2065_v22 = vpop.f32.mrb[29].mxu1  ;;  %v3628_v37 = vpop.f32.mrb[29].mxu0 }
 0x203   : > { %3814 = vst.msk [vmem:[%s6488_s26 + $0xc0] sm:$0xff] %vm3789_vm2, %v3781_v11  ;;  %v3751_v33 = vadd.f32 %v6479_v56, %v3712_v13  ;;  %v5207_v12 = vadd.f32 %v3628_v37, %v2065_v22 }
 0x204   : > { %v3784_v16 = vmax.f32 %v3752_v19, 0.0  ;;  %v3715_v20 = vmul.f32 %v5206_v21, %v6474_v52 }
 0x205   : > { %v3783_v1 = vmax.f32 %v3751_v33, 0.0  ;;  %v3714_v3 = vmul.f32 %v5207_v12, %v6474_v52  ;;  %v4975_v61 = vpop.f32.mrb[30].mxu1  ;;  %v5175_v14 = vpop.f32.mrb[30].mxu0 }
 0x206   : > { %3817 = vst.msk [vmem:[%s6488_s26 + $0xd8] sm:$0xff] %vm3789_vm2, %v3784_v16  ;;  %v3754_v18 = vadd.f32 %v6479_v56, %v3715_v20  ;;  %v5208_v23 = vadd.f32 %v5175_v14, %v4975_v61  ;;  %v2075_v26 = vpop.f32.mrb[31].mxu1  ;;  %v3638_v27 = vpop.f32.mrb[31].mxu0 }
 0x207   : > { %3816 = vst.msk [vmem:[%s6488_s26 + $0xd0] sm:$0xff] %vm3789_vm2, %v3783_v1  ;;  %v3753_v29 = vadd.f32 %v6479_v56, %v3714_v3  ;;  %v5209_v30 = vadd.f32 %v3638_v27, %v2075_v26 }
 0x208   : > { %v3786_v31 = vmax.f32 %v3754_v18, 0.0  ;;  %v3717_v32 = vmul.f32 %v5208_v23, %v6474_v52 }
 0x209   : > { %v3785_v34 = vmax.f32 %v3753_v29, 0.0  ;;  %v3716_v35 = vmul.f32 %v5209_v30, %v6474_v52 }
 0x20a   : > { %3819 = vst.msk [vmem:[%s6488_s26 + $0xe8] sm:$0xff] %vm3789_vm2, %v3786_v31  ;;  %v3756_v36 = vadd.f32 %v6479_v56, %v3717_v32 }
 0x20b   : > { %3818 = vst.msk [vmem:[%s6488_s26 + $0xe0] sm:$0xff] %vm3789_vm2, %v3785_v34  ;;  %v3755_v38 = vadd.f32 %v6479_v56, %v3716_v35 }
 0x20c   : > { %v3788_v39 = vmax.f32 %v3756_v36, 0.0 }
 0x20d   : > { %v3787_v40 = vmax.f32 %v3755_v38, 0.0 }
 0x20e   : > { %3821 = vst.msk [vmem:[%s6488_s26 + $0xf8] sm:$0xff] %vm3789_vm2, %v3788_v39 }
 0x20f   : > { %3820 = vst.msk [vmem:[%s6488_s26 + $0xf0] sm:$0xff] %vm3789_vm2, %v3787_v40 }
 0x210 PF: > { %s14_s17 = sadd.s32 1, %s5481_s17   ;;  %s6744_s15 = smov %s5477_s16 }
 0x211   : > { %p11_p5 = scmp.ge.s32.totalorder %s14_s17, 4   ;;  %s6745_s16 = smov %s6747_s18 }
 0x213   :  { %13 = sbr.rel (!%p11_p5) target bundleno = 2 (0x2), region = 77 }

</bundles_post_ra>
